<compile_context>
chip_gen: v7x
topology: tpu7x:2x2x1
jax: 0.10.0
libtpu: 0.0.40
codegen_flags: <defaults>
</compile_context>

<pallas_src>
import functools

import jax
import jax.numpy as jnp
from jax.experimental import pallas as pl
from jax.experimental.pallas import tpu as pltpu


F_PAD = 128  # lane-dense padded feature width (input and hidden features)
N_PAD = 128  # node count padded to a full vreg / MXU width


# ----------------------------------------------------------------------------
# Fused kernel: one invocation, all layers statically unrolled.
# ----------------------------------------------------------------------------
def _graphsage_kernel(adj_ref, dinv_ref, x_ref, ws_ref, wn_ref, b_ref, out_ref,
                      *, n_layers):
    adj = adj_ref[...]            # (N_PAD, N_PAD) bf16, binary 0/1 (exact in bf16)
    dinv = dinv_ref[...]          # (N_PAD, 1)     f32, 1/in-degree (0 for isolated nodes)
    h = x_ref[...]                # (N_PAD, F_PAD) bf16, padded input features

    for layer in range(n_layers):  # static unroll: all weights are VMEM-resident
        # Mean aggregation: binary-adjacency matmul on the MXU (f32 accumulate),
        # exact f32 per-row 1/deg scale on the VPU (hidden under MXU slack).
        agg = jnp.dot(adj, h, preferred_element_type=jnp.float32)          # (N, F) f32
        h_neigh = (agg * dinv).astype(jnp.bfloat16)                        # (N, F) bf16

        # Self + neighbor projections as two independent MXU contractions,
        # accumulated in f32 (no (N, 2F) concat materialization).
        out = jnp.dot(h, ws_ref[layer], preferred_element_type=jnp.float32)
        out = out + jnp.dot(h_neigh, wn_ref[layer], preferred_element_type=jnp.float32)
        out = out + b_ref[layer]                                           # (1, F) f32 bias

        if layer < n_layers - 1:
            h = jnp.maximum(out, 0.0).astype(jnp.bfloat16)                 # ReLU between layers
        else:
            out_ref[...] = out.astype(out_ref.dtype)                       # no ReLU on last layer


# ----------------------------------------------------------------------------
# Wrapper: pad / stack parameters, single pallas_call (no grid).
# ----------------------------------------------------------------------------
def graphsage_forward(adj_binary, in_feat, params):
    """adj_binary[v, u] = 1.0 iff edge u -> v (message flows u -> v)."""
    n = in_feat.shape[0]
    f_in = in_feat.shape[1]
    n_layers = len(params)
    f_out_last = params[-1][0].shape[1]

    assert n <= N_PAD and f_in <= F_PAD
    for (ws_t, wn_t, _) in params:
        assert ws_t.shape[0] <= F_PAD and ws_t.shape[1] <= F_PAD
        assert wn_t.shape == ws_t.shape

    # Per-layer weights zero-padded to (F_PAD, F_PAD); stacked, bf16 for the MXU.
    ws_stack, wn_stack, b_stack = [], [], []
    for (ws_t, wn_t, b) in params:
        fi, fo = ws_t.shape
        ws_stack.append(jnp.zeros((F_PAD, F_PAD), jnp.float32).at[:fi, :fo].set(ws_t))
        wn_stack.append(jnp.zeros((F_PAD, F_PAD), jnp.float32).at[:fi, :fo].set(wn_t))
        b_stack.append(jnp.zeros((F_PAD,), jnp.float32).at[:fo].set(b))
    ws_stack = jnp.stack(ws_stack).astype(jnp.bfloat16)             # (L, F_PAD, F_PAD)
    wn_stack = jnp.stack(wn_stack).astype(jnp.bfloat16)             # (L, F_PAD, F_PAD)
    b_stack = jnp.stack(b_stack).reshape(n_layers, 1, F_PAD)        # (L, 1, F_PAD) f32

    # Binary adjacency padded to (N_PAD, N_PAD); 0/1 is exact in bf16.
    adj_pad = jnp.zeros((N_PAD, N_PAD), jnp.float32).at[:n, :n].set(adj_binary)
    deg = adj_pad.sum(axis=1, keepdims=True)                         # in-degree per node
    deg_inv = jnp.where(deg > 0, 1.0 / deg, 0.0).astype(jnp.float32)  # (N_PAD, 1) f32, exact
    adj_bf16 = adj_pad.astype(jnp.bfloat16)

    # Input features zero-padded to (N_PAD, F_PAD), bf16 for the MXU.
    x_pad = jnp.zeros((N_PAD, F_PAD), jnp.float32)
    x_pad = x_pad.at[:n, :f_in].set(in_feat).astype(jnp.bfloat16)

    kernel = functools.partial(_graphsage_kernel, n_layers=n_layers)

    out_pad = pl.pallas_call(
        kernel,
        out_shape=jax.ShapeDtypeStruct((N_PAD, F_PAD), jnp.float32),
        # No grid: every operand is a whole-array VMEM-resident block.
        in_specs=[pl.BlockSpec(memory_space=pltpu.MemorySpace.VMEM)] * 6,
        out_specs=pl.BlockSpec(memory_space=pltpu.MemorySpace.VMEM),
        compiler_params=pltpu.CompilerParams(vmem_limit_bytes=64 * 1024 * 1024),
    )(adj_bf16, deg_inv, x_pad, ws_stack, wn_stack, b_stack)

    return out_pad[:n, :f_out_last]


# ----------------------------------------------------------------------------
# Pure-JAX f32 reference (sanity check against the bf16-operand kernel)
# ----------------------------------------------------------------------------
def graphsage_reference(adj_norm, in_feat, params):
    h = in_feat
    for li, (ws_t, wn_t, b) in enumerate(params):
        h_neigh = adj_norm @ h
        h = h @ ws_t + h_neigh @ wn_t + b
        if li < len(params) - 1:
            h = jax.nn.relu(h)
    return h


# ----------------------------------------------------------------------------
# Deterministic parameter init (Linear-style uniform, synthetic)
# ----------------------------------------------------------------------------
def init_params(key, in_feats, h_feats, n_layers=6):
    params = []
    dims = [(in_feats, h_feats)] + [(h_feats, h_feats)] * (n_layers - 1)
    for (fi, fo) in dims:
        key, k1, k2, k3 = jax.random.split(key, 4)
        bound = 1.0 / jnp.sqrt(fi)
        # weights stored pre-transposed: (F_in, F_out)
        w_self_t = jax.random.uniform(k1, (fi, fo), jnp.float32, -bound, bound)
        w_neigh_t = jax.random.uniform(k2, (fi, fo), jnp.float32, -bound, bound)
        bias = jax.random.uniform(k3, (fo,), jnp.float32, -bound, bound)
        params.append((w_self_t, w_neigh_t, bias))
    return params


if __name__ == "__main__":
    key = jax.random.PRNGKey(0)

    N = 64          # number of nodes
    IN_FEATS = 16
    H_FEATS = 32

    # Synthetic random directed graph -> dense binary adjacency (adj[v, u] = edge u->v)
    key, k_adj, k_feat, k_par = jax.random.split(key, 4)
    adj = (jax.random.uniform(k_adj, (N, N)) < 0.1).astype(jnp.float32)
    deg = adj.sum(axis=1, keepdims=True)                      # in-degree per node
    deg_inv = jnp.where(deg > 0, 1.0 / deg, 0.0)              # zero-degree -> mean = 0
    adj_norm = adj * deg_inv                                  # row-normalized (reference only)

    in_feat = jax.random.normal(k_feat, (N, IN_FEATS), jnp.float32)
    params = init_params(k_par, IN_FEATS, H_FEATS, n_layers=6)

    out = graphsage_forward(adj, in_feat, params)
    out = jax.block_until_ready(out)

    # sanity: correct shape, finite values, loosely matches f32 reference
    assert out.shape == (N, H_FEATS)
    assert bool(jnp.all(jnp.isfinite(out)))
    ref = graphsage_reference(adj_norm, in_feat, params)
    rel_err = jnp.max(jnp.abs(out - ref)) / (jnp.max(jnp.abs(ref)) + 1e-6)
    assert float(rel_err) < 0.1, f"bf16 kernel deviates from f32 reference: {float(rel_err)}"

    print("KERNEL_OK")
</pallas_src>

<mosaic_0001>
module attributes {stable_mosaic.version = 11 : i64} {
  func.func @_graphsage_kernel(%arg0: memref<128x128xbf16, #tpu.memory_space<vmem>>, %arg1: memref<128x1xf32, #tpu.memory_space<vmem>>, %arg2: memref<128x128xbf16, #tpu.memory_space<vmem>>, %arg3: memref<6x128x128xbf16, #tpu.memory_space<vmem>>, %arg4: memref<6x128x128xbf16, #tpu.memory_space<vmem>>, %arg5: memref<6x1x128xf32, #tpu.memory_space<vmem>>, %arg6: memref<128x128xf32, #tpu.memory_space<vmem>>) attributes {dimension_semantics = [], scalar_prefetch = 0 : i64, scratch_operands = 0 : i64, tpu.core_type = #tpu.core_type<tc>} {
    %c0 = arith.constant 0 : index
    %c0_0 = arith.constant 0 : index
    %0 = vector.load %arg0[%c0, %c0_0] : memref<128x128xbf16, #tpu.memory_space<vmem>>, vector<128x128xbf16>
    %c0_1 = arith.constant 0 : index
    %c0_2 = arith.constant 0 : index
    %1 = vector.load %arg1[%c0_1, %c0_2] : memref<128x1xf32, #tpu.memory_space<vmem>>, vector<128x1xf32>
    %c0_3 = arith.constant 0 : index
    %c0_4 = arith.constant 0 : index
    %2 = vector.load %arg2[%c0_3, %c0_4] : memref<128x128xbf16, #tpu.memory_space<vmem>>, vector<128x128xbf16>
    %cst = arith.constant dense<0.000000e+00> : vector<128x128xf32>
    %3 = tpu.matmul %0, %2, %cst {dimension_numbers = #tpu.dot_dimension_numbers<[1], [0], [0], [1], [0, 0, 1, 1], [], []>} : vector<128x128xbf16>, vector<128x128xbf16>, vector<128x128xf32> -> vector<128x128xf32>
    %4 = vector.broadcast %1 : vector<128x1xf32> to vector<128x128xf32>
    %5 = arith.mulf %3, %4 : vector<128x128xf32>
    %6 = arith.truncf %5 : vector<128x128xf32> to vector<128x128xbf16>
    %c0_5 = arith.constant 0 : index
    %c0_6 = arith.constant 0 : index
    %c0_7 = arith.constant 0 : index
    %7 = vector.load %arg3[%c0_5, %c0_6, %c0_7] : memref<6x128x128xbf16, #tpu.memory_space<vmem>>, vector<1x128x128xbf16>
    %8 = vector.shape_cast %7 : vector<1x128x128xbf16> to vector<128x128xbf16>
    %cst_8 = arith.constant dense<0.000000e+00> : vector<128x128xf32>
    %9 = tpu.matmul %2, %8, %cst_8 {dimension_numbers = #tpu.dot_dimension_numbers<[1], [0], [0], [1], [0, 0, 1, 1], [], []>} : vector<128x128xbf16>, vector<128x128xbf16>, vector<128x128xf32> -> vector<128x128xf32>
    %c0_9 = arith.constant 0 : index
    %c0_10 = arith.constant 0 : index
    %c0_11 = arith.constant 0 : index
    %10 = vector.load %arg4[%c0_9, %c0_10, %c0_11] : memref<6x128x128xbf16, #tpu.memory_space<vmem>>, vector<1x128x128xbf16>
    %11 = vector.shape_cast %10 : vector<1x128x128xbf16> to vector<128x128xbf16>
    %cst_12 = arith.constant dense<0.000000e+00> : vector<128x128xf32>
    %12 = tpu.matmul %6, %11, %cst_12 {dimension_numbers = #tpu.dot_dimension_numbers<[1], [0], [0], [1], [0, 0, 1, 1], [], []>} : vector<128x128xbf16>, vector<128x128xbf16>, vector<128x128xf32> -> vector<128x128xf32>
    %13 = arith.addf %9, %12 : vector<128x128xf32>
    %c0_13 = arith.constant 0 : index
    %c0_14 = arith.constant 0 : index
    %c0_15 = arith.constant 0 : index
    %14 = vector.load %arg5[%c0_13, %c0_14, %c0_15] : memref<6x1x128xf32, #tpu.memory_space<vmem>>, vector<1x1x128xf32>
    %15 = vector.shape_cast %14 : vector<1x1x128xf32> to vector<1x128xf32>
    %16 = vector.broadcast %15 : vector<1x128xf32> to vector<128x128xf32>
    %17 = arith.addf %13, %16 : vector<128x128xf32>
    %cst_16 = arith.constant 0.000000e+00 : f32
    %18 = vector.broadcast %cst_16 : f32 to vector<128x128xf32>
    %19 = arith.maximumf %17, %18 : vector<128x128xf32>
    %20 = arith.truncf %19 : vector<128x128xf32> to vector<128x128xbf16>
    %cst_17 = arith.constant dense<0.000000e+00> : vector<128x128xf32>
    %21 = tpu.matmul %0, %20, %cst_17 {dimension_numbers = #tpu.dot_dimension_numbers<[1], [0], [0], [1], [0, 0, 1, 1], [], []>} : vector<128x128xbf16>, vector<128x128xbf16>, vector<128x128xf32> -> vector<128x128xf32>
    %22 = vector.broadcast %1 : vector<128x1xf32> to vector<128x128xf32>
    %23 = arith.mulf %21, %22 : vector<128x128xf32>
    %24 = arith.truncf %23 : vector<128x128xf32> to vector<128x128xbf16>
    %c1 = arith.constant 1 : index
    %c0_18 = arith.constant 0 : index
    %c0_19 = arith.constant 0 : index
    %25 = vector.load %arg3[%c1, %c0_18, %c0_19] : memref<6x128x128xbf16, #tpu.memory_space<vmem>>, vector<1x128x128xbf16>
    %26 = vector.shape_cast %25 : vector<1x128x128xbf16> to vector<128x128xbf16>
    %cst_20 = arith.constant dense<0.000000e+00> : vector<128x128xf32>
    %27 = tpu.matmul %20, %26, %cst_20 {dimension_numbers = #tpu.dot_dimension_numbers<[1], [0], [0], [1], [0, 0, 1, 1], [], []>} : vector<128x128xbf16>, vector<128x128xbf16>, vector<128x128xf32> -> vector<128x128xf32>
    %c1_21 = arith.constant 1 : index
    %c0_22 = arith.constant 0 : index
    %c0_23 = arith.constant 0 : index
    %28 = vector.load %arg4[%c1_21, %c0_22, %c0_23] : memref<6x128x128xbf16, #tpu.memory_space<vmem>>, vector<1x128x128xbf16>
    %29 = vector.shape_cast %28 : vector<1x128x128xbf16> to vector<128x128xbf16>
    %cst_24 = arith.constant dense<0.000000e+00> : vector<128x128xf32>
    %30 = tpu.matmul %24, %29, %cst_24 {dimension_numbers = #tpu.dot_dimension_numbers<[1], [0], [0], [1], [0, 0, 1, 1], [], []>} : vector<128x128xbf16>, vector<128x128xbf16>, vector<128x128xf32> -> vector<128x128xf32>
    %31 = arith.addf %27, %30 : vector<128x128xf32>
    %c1_25 = arith.constant 1 : index
    %c0_26 = arith.constant 0 : index
    %c0_27 = arith.constant 0 : index
    %32 = vector.load %arg5[%c1_25, %c0_26, %c0_27] : memref<6x1x128xf32, #tpu.memory_space<vmem>>, vector<1x1x128xf32>
    %33 = vector.shape_cast %32 : vector<1x1x128xf32> to vector<1x128xf32>
    %34 = vector.broadcast %33 : vector<1x128xf32> to vector<128x128xf32>
    %35 = arith.addf %31, %34 : vector<128x128xf32>
    %cst_28 = arith.constant 0.000000e+00 : f32
    %36 = vector.broadcast %cst_28 : f32 to vector<128x128xf32>
    %37 = arith.maximumf %35, %36 : vector<128x128xf32>
    %38 = arith.truncf %37 : vector<128x128xf32> to vector<128x128xbf16>
    %cst_29 = arith.constant dense<0.000000e+00> : vector<128x128xf32>
    %39 = tpu.matmul %0, %38, %cst_29 {dimension_numbers = #tpu.dot_dimension_numbers<[1], [0], [0], [1], [0, 0, 1, 1], [], []>} : vector<128x128xbf16>, vector<128x128xbf16>, vector<128x128xf32> -> vector<128x128xf32>
    %40 = vector.broadcast %1 : vector<128x1xf32> to vector<128x128xf32>
    %41 = arith.mulf %39, %40 : vector<128x128xf32>
    %42 = arith.truncf %41 : vector<128x128xf32> to vector<128x128xbf16>
    %c2 = arith.constant 2 : index
    %c0_30 = arith.constant 0 : index
    %c0_31 = arith.constant 0 : index
    %43 = vector.load %arg3[%c2, %c0_30, %c0_31] : memref<6x128x128xbf16, #tpu.memory_space<vmem>>, vector<1x128x128xbf16>
    %44 = vector.shape_cast %43 : vector<1x128x128xbf16> to vector<128x128xbf16>
    %cst_32 = arith.constant dense<0.000000e+00> : vector<128x128xf32>
    %45 = tpu.matmul %38, %44, %cst_32 {dimension_numbers = #tpu.dot_dimension_numbers<[1], [0], [0], [1], [0, 0, 1, 1], [], []>} : vector<128x128xbf16>, vector<128x128xbf16>, vector<128x128xf32> -> vector<128x128xf32>
    %c2_33 = arith.constant 2 : index
    %c0_34 = arith.constant 0 : index
    %c0_35 = arith.constant 0 : index
    %46 = vector.load %arg4[%c2_33, %c0_34, %c0_35] : memref<6x128x128xbf16, #tpu.memory_space<vmem>>, vector<1x128x128xbf16>
    %47 = vector.shape_cast %46 : vector<1x128x128xbf16> to vector<128x128xbf16>
    %cst_36 = arith.constant dense<0.000000e+00> : vector<128x128xf32>
    %48 = tpu.matmul %42, %47, %cst_36 {dimension_numbers = #tpu.dot_dimension_numbers<[1], [0], [0], [1], [0, 0, 1, 1], [], []>} : vector<128x128xbf16>, vector<128x128xbf16>, vector<128x128xf32> -> vector<128x128xf32>
    %49 = arith.addf %45, %48 : vector<128x128xf32>
    %c2_37 = arith.constant 2 : index
    %c0_38 = arith.constant 0 : index
    %c0_39 = arith.constant 0 : index
    %50 = vector.load %arg5[%c2_37, %c0_38, %c0_39] : memref<6x1x128xf32, #tpu.memory_space<vmem>>, vector<1x1x128xf32>
    %51 = vector.shape_cast %50 : vector<1x1x128xf32> to vector<1x128xf32>
    %52 = vector.broadcast %51 : vector<1x128xf32> to vector<128x128xf32>
    %53 = arith.addf %49, %52 : vector<128x128xf32>
    %cst_40 = arith.constant 0.000000e+00 : f32
    %54 = vector.broadcast %cst_40 : f32 to vector<128x128xf32>
    %55 = arith.maximumf %53, %54 : vector<128x128xf32>
    %56 = arith.truncf %55 : vector<128x128xf32> to vector<128x128xbf16>
    %cst_41 = arith.constant dense<0.000000e+00> : vector<128x128xf32>
    %57 = tpu.matmul %0, %56, %cst_41 {dimension_numbers = #tpu.dot_dimension_numbers<[1], [0], [0], [1], [0, 0, 1, 1], [], []>} : vector<128x128xbf16>, vector<128x128xbf16>, vector<128x128xf32> -> vector<128x128xf32>
    %58 = vector.broadcast %1 : vector<128x1xf32> to vector<128x128xf32>
    %59 = arith.mulf %57, %58 : vector<128x128xf32>
    %60 = arith.truncf %59 : vector<128x128xf32> to vector<128x128xbf16>
    %c3 = arith.constant 3 : index
    %c0_42 = arith.constant 0 : index
    %c0_43 = arith.constant 0 : index
    %61 = vector.load %arg3[%c3, %c0_42, %c0_43] : memref<6x128x128xbf16, #tpu.memory_space<vmem>>, vector<1x128x128xbf16>
    %62 = vector.shape_cast %61 : vector<1x128x128xbf16> to vector<128x128xbf16>
    %cst_44 = arith.constant dense<0.000000e+00> : vector<128x128xf32>
    %63 = tpu.matmul %56, %62, %cst_44 {dimension_numbers = #tpu.dot_dimension_numbers<[1], [0], [0], [1], [0, 0, 1, 1], [], []>} : vector<128x128xbf16>, vector<128x128xbf16>, vector<128x128xf32> -> vector<128x128xf32>
    %c3_45 = arith.constant 3 : index
    %c0_46 = arith.constant 0 : index
    %c0_47 = arith.constant 0 : index
    %64 = vector.load %arg4[%c3_45, %c0_46, %c0_47] : memref<6x128x128xbf16, #tpu.memory_space<vmem>>, vector<1x128x128xbf16>
    %65 = vector.shape_cast %64 : vector<1x128x128xbf16> to vector<128x128xbf16>
    %cst_48 = arith.constant dense<0.000000e+00> : vector<128x128xf32>
    %66 = tpu.matmul %60, %65, %cst_48 {dimension_numbers = #tpu.dot_dimension_numbers<[1], [0], [0], [1], [0, 0, 1, 1], [], []>} : vector<128x128xbf16>, vector<128x128xbf16>, vector<128x128xf32> -> vector<128x128xf32>
    %67 = arith.addf %63, %66 : vector<128x128xf32>
    %c3_49 = arith.constant 3 : index
    %c0_50 = arith.constant 0 : index
    %c0_51 = arith.constant 0 : index
    %68 = vector.load %arg5[%c3_49, %c0_50, %c0_51] : memref<6x1x128xf32, #tpu.memory_space<vmem>>, vector<1x1x128xf32>
    %69 = vector.shape_cast %68 : vector<1x1x128xf32> to vector<1x128xf32>
    %70 = vector.broadcast %69 : vector<1x128xf32> to vector<128x128xf32>
    %71 = arith.addf %67, %70 : vector<128x128xf32>
    %cst_52 = arith.constant 0.000000e+00 : f32
    %72 = vector.broadcast %cst_52 : f32 to vector<128x128xf32>
    %73 = arith.maximumf %71, %72 : vector<128x128xf32>
    %74 = arith.truncf %73 : vector<128x128xf32> to vector<128x128xbf16>
    %cst_53 = arith.constant dense<0.000000e+00> : vector<128x128xf32>
    %75 = tpu.matmul %0, %74, %cst_53 {dimension_numbers = #tpu.dot_dimension_numbers<[1], [0], [0], [1], [0, 0, 1, 1], [], []>} : vector<128x128xbf16>, vector<128x128xbf16>, vector<128x128xf32> -> vector<128x128xf32>
    %76 = vector.broadcast %1 : vector<128x1xf32> to vector<128x128xf32>
    %77 = arith.mulf %75, %76 : vector<128x128xf32>
    %78 = arith.truncf %77 : vector<128x128xf32> to vector<128x128xbf16>
    %c4 = arith.constant 4 : index
    %c0_54 = arith.constant 0 : index
    %c0_55 = arith.constant 0 : index
    %79 = vector.load %arg3[%c4, %c0_54, %c0_55] : memref<6x128x128xbf16, #tpu.memory_space<vmem>>, vector<1x128x128xbf16>
    %80 = vector.shape_cast %79 : vector<1x128x128xbf16> to vector<128x128xbf16>
    %cst_56 = arith.constant dense<0.000000e+00> : vector<128x128xf32>
    %81 = tpu.matmul %74, %80, %cst_56 {dimension_numbers = #tpu.dot_dimension_numbers<[1], [0], [0], [1], [0, 0, 1, 1], [], []>} : vector<128x128xbf16>, vector<128x128xbf16>, vector<128x128xf32> -> vector<128x128xf32>
    %c4_57 = arith.constant 4 : index
    %c0_58 = arith.constant 0 : index
    %c0_59 = arith.constant 0 : index
    %82 = vector.load %arg4[%c4_57, %c0_58, %c0_59] : memref<6x128x128xbf16, #tpu.memory_space<vmem>>, vector<1x128x128xbf16>
    %83 = vector.shape_cast %82 : vector<1x128x128xbf16> to vector<128x128xbf16>
    %cst_60 = arith.constant dense<0.000000e+00> : vector<128x128xf32>
    %84 = tpu.matmul %78, %83, %cst_60 {dimension_numbers = #tpu.dot_dimension_numbers<[1], [0], [0], [1], [0, 0, 1, 1], [], []>} : vector<128x128xbf16>, vector<128x128xbf16>, vector<128x128xf32> -> vector<128x128xf32>
    %85 = arith.addf %81, %84 : vector<128x128xf32>
    %c4_61 = arith.constant 4 : index
    %c0_62 = arith.constant 0 : index
    %c0_63 = arith.constant 0 : index
    %86 = vector.load %arg5[%c4_61, %c0_62, %c0_63] : memref<6x1x128xf32, #tpu.memory_space<vmem>>, vector<1x1x128xf32>
    %87 = vector.shape_cast %86 : vector<1x1x128xf32> to vector<1x128xf32>
    %88 = vector.broadcast %87 : vector<1x128xf32> to vector<128x128xf32>
    %89 = arith.addf %85, %88 : vector<128x128xf32>
    %cst_64 = arith.constant 0.000000e+00 : f32
    %90 = vector.broadcast %cst_64 : f32 to vector<128x128xf32>
    %91 = arith.maximumf %89, %90 : vector<128x128xf32>
    %92 = arith.truncf %91 : vector<128x128xf32> to vector<128x128xbf16>
    %cst_65 = arith.constant dense<0.000000e+00> : vector<128x128xf32>
    %93 = tpu.matmul %0, %92, %cst_65 {dimension_numbers = #tpu.dot_dimension_numbers<[1], [0], [0], [1], [0, 0, 1, 1], [], []>} : vector<128x128xbf16>, vector<128x128xbf16>, vector<128x128xf32> -> vector<128x128xf32>
    %94 = vector.broadcast %1 : vector<128x1xf32> to vector<128x128xf32>
    %95 = arith.mulf %93, %94 : vector<128x128xf32>
    %96 = arith.truncf %95 : vector<128x128xf32> to vector<128x128xbf16>
    %c5 = arith.constant 5 : index
    %c0_66 = arith.constant 0 : index
    %c0_67 = arith.constant 0 : index
    %97 = vector.load %arg3[%c5, %c0_66, %c0_67] : memref<6x128x128xbf16, #tpu.memory_space<vmem>>, vector<1x128x128xbf16>
    %98 = vector.shape_cast %97 : vector<1x128x128xbf16> to vector<128x128xbf16>
    %cst_68 = arith.constant dense<0.000000e+00> : vector<128x128xf32>
    %99 = tpu.matmul %92, %98, %cst_68 {dimension_numbers = #tpu.dot_dimension_numbers<[1], [0], [0], [1], [0, 0, 1, 1], [], []>} : vector<128x128xbf16>, vector<128x128xbf16>, vector<128x128xf32> -> vector<128x128xf32>
    %c5_69 = arith.constant 5 : index
    %c0_70 = arith.constant 0 : index
    %c0_71 = arith.constant 0 : index
    %100 = vector.load %arg4[%c5_69, %c0_70, %c0_71] : memref<6x128x128xbf16, #tpu.memory_space<vmem>>, vector<1x128x128xbf16>
    %101 = vector.shape_cast %100 : vector<1x128x128xbf16> to vector<128x128xbf16>
    %cst_72 = arith.constant dense<0.000000e+00> : vector<128x128xf32>
    %102 = tpu.matmul %96, %101, %cst_72 {dimension_numbers = #tpu.dot_dimension_numbers<[1], [0], [0], [1], [0, 0, 1, 1], [], []>} : vector<128x128xbf16>, vector<128x128xbf16>, vector<128x128xf32> -> vector<128x128xf32>
    %103 = arith.addf %99, %102 : vector<128x128xf32>
    %c5_73 = arith.constant 5 : index
    %c0_74 = arith.constant 0 : index
    %c0_75 = arith.constant 0 : index
    %104 = vector.load %arg5[%c5_73, %c0_74, %c0_75] : memref<6x1x128xf32, #tpu.memory_space<vmem>>, vector<1x1x128xf32>
    %105 = vector.shape_cast %104 : vector<1x1x128xf32> to vector<1x128xf32>
    %106 = vector.broadcast %105 : vector<1x128xf32> to vector<128x128xf32>
    %107 = arith.addf %103, %106 : vector<128x128xf32>
    %c0_76 = arith.constant 0 : index
    %c0_77 = arith.constant 0 : index
    %108 = vector.load %arg6[%c0_76, %c0_77] : memref<128x128xf32, #tpu.memory_space<vmem>>, vector<128x128xf32>
    tpu.vector_store %arg6[%c0_76, %c0_77], %107 {strides = array<i32>} : memref<128x128xf32, #tpu.memory_space<vmem>>, vector<128x128xf32>,
    return
  }
}

</mosaic_0001>

<bundles_post_ra>
// kernel: tpu_custom_call.1
= control target key start
LH: loop header
LB: loop body
LE: loop exit
PB: predicated region body
PF: predicated region fallthrough
CT: control target
= control target key end

     0   :  { %11 = vsyncpa [#allocation3], 0  ;;  %s5275_s0 = inlined_call_operand.hbm [shape: bf16[128,128], index: 0, kind: input, shape index: {}]   ;;  %s5276_s1 = inlined_call_operand.hbm [shape: f32[128,1], index: 1, kind: input, shape index: {}]   ;;  %s5277_s2 = inlined_call_operand.hbm [shape: bf16[128,128], index: 2, kind: input, shape index: {}]   ;;  %s5278_s3 = inlined_call_operand.hbm [shape: bf16[6,128,128], index: 3, kind: input, shape index: {}]   ;;  %s5279_s4 = inlined_call_operand.hbm [shape: bf16[6,128,128], index: 4, kind: input, shape index: {}]   ;;  %s5280_s5 = inlined_call_operand.hbm [shape: f32[6,1,128], index: 5, kind: input, shape index: {}]   ;;  %s5281_s6 = inlined_call_operand.hbm [shape: f32[128,128], index: 6, kind: output, shape index: {}]  }
   0x1   :  { %12 = vsyncpa [#allocation6], 0 }
   0x2   :  { %13 = vsyncpa [#allocation9], 0 }
   0x3   :  { %14 = vsyncpa [#allocation12], 0 }
   0x4   :  { %15 = vsyncpa [#allocation4], 0  ;;  %s4682_s21 = smov [#allocation5]   ;;  %s4518_s25 = scalar_lea.hbm %s5276_s1, 2048 }
   0x5   :  { %s33_s22 = sshll.u32 %s4682_s21, 4  ;;  %p4519_p0 = scmp.ne.s32.totalorder %s5276_s1, %s4518_s25  ;;  %s34_s22 = int_to_ptr.vmem [resolvable:$true] %s33_s22 }
   0x6   :  { %p4522_p1 = scmp.lt.u32.totalorder %s4518_s25, %s5276_s1 }
   0x8   :  { %p4524_p2 = pnand %p4522_p1, %p4519_p0 }
   0xa   :  { %4527 = shalt.err (!%p4524_p2)
}
   0xb   :  { %s4528_s30 = scalar_lea.vmem %s34_s22, 2048  ;;  %p4533_p4 = scmp.lt.s32.totalorder %s34_s22, %s34_s22 }
   0xc   :  { %p4529_p3 = scmp.ne.s32.totalorder %s34_s22, %s4528_s30  ;;  %p4534_p5 = scmp.lt.s32.totalorder %s4528_s30, %s4528_s30 }
   0xe   :  { %p4535_p6 = por %p4534_p5, %p4533_p4 }
  0x10   :  { %p4536_p7 = pnand %p4535_p6, %p4529_p3 }
  0x12   :  { %4539 = shalt.err (!%p4536_p7)
}
  0x13   :  { %s4683_s7 = smov 128   ;;  %s4684_s8 = smov 8  }
  0x14   :  { %39 = dma.hbm_to_vmem [thread:$0]  %s5276_s1, 2048, %s34_s22, [#allocation6], %s4683_s7, %s4683_s7, %s4684_s8  }
  0x15   :  { %s4685_s11 = smov [#allocation8]   ;;  %s4686_s13 = smov [#allocation2]  }
  0x16   :  { %s57_s12 = sshll.u32 %s4685_s11, 4  ;;  %s21_s14 = sshll.u32 %s4686_s13, 4  ;;  %s58_s12 = int_to_ptr.vmem [resolvable:$true] %s57_s12  ;;  %s22_s14 = int_to_ptr.vmem [resolvable:$true] %s21_s14 }
  0x17   :  { %s4540_s17 = scalar_lea.hbm %s5278_s3, 6144 }
  0x18   :  { %p4541_p8 = scmp.ne.s32.totalorder %s5278_s3, %s4540_s17  ;;  %p4544_p9 = scmp.lt.u32.totalorder %s4540_s17, %s5278_s3 }
  0x1a   :  { %p4546_p10 = pnand %p4544_p9, %p4541_p8 }
  0x1c   :  { %4549 = shalt.err (!%p4546_p10)
}
  0x1d   :  { %s4550_s1 = scalar_lea.vmem %s58_s12, 6144  ;;  %p4555_p12 = scmp.lt.s32.totalorder %s58_s12, %s58_s12 }
  0x1e   :  { %p4551_p11 = scmp.ne.s32.totalorder %s58_s12, %s4550_s1  ;;  %p4556_p13 = scmp.lt.s32.totalorder %s4550_s1, %s4550_s1 }
  0x20   :  { %p4557_p0 = por %p4556_p13, %p4555_p12 }
  0x22   :  { %p4558_p1 = pnand %p4557_p0, %p4551_p11 }
  0x24   :  { %4561 = shalt.err (!%p4558_p1)
}
  0x25   :  { %s4687_s22 = smov 64   ;;  %s4688_s23 = smov 4  }
  0x26   :  { %63 = dma.hbm_to_vmem [thread:$0]  %s5278_s3, 6144, %s58_s12, [#allocation9], %s4687_s22, %s4687_s22, %s4688_s23  }
  0x27   :  { %s4562_s28 = scalar_lea.hbm %s5275_s0, 1024 }
  0x28   :  { %p4563_p2 = scmp.ne.s32.totalorder %s5275_s0, %s4562_s28  ;;  %p4566_p3 = scmp.lt.u32.totalorder %s4562_s28, %s5275_s0 }
  0x2a   :  { %p4568_p4 = pnand %p4566_p3, %p4563_p2 }
  0x2c   :  { %4571 = shalt.err (!%p4568_p4)
}
  0x2d   :  { %s4572_s11 = scalar_lea.vmem %s22_s14, 1024  ;;  %p4577_p6 = scmp.lt.s32.totalorder %s22_s14, %s22_s14 }
  0x2e   :  { %p4573_p5 = scmp.ne.s32.totalorder %s22_s14, %s4572_s11  ;;  %p4578_p7 = scmp.lt.s32.totalorder %s4572_s11, %s4572_s11 }
  0x30   :  { %p4579_p8 = por %p4578_p7, %p4577_p6 }
  0x32   :  { %p4580_p9 = pnand %p4579_p8, %p4573_p5 }
  0x34   :  { %4583 = shalt.err (!%p4580_p9)
}
  0x35   :  { %27 = dma.hbm_to_vmem [thread:$0]  %s5275_s0, 1024, %s22_s14, [#allocation3], %s4687_s22, %s4687_s22, %s4688_s23  }
  0x36   :  { %s4689_s13 = smov [#allocation7]   ;;  %s4690_s16 = smov [#allocation10]  }
  0x37   :  { %s45_s15 = sshll.u32 %s4689_s13, 4  ;;  %s69_s17 = sshll.u32 %s4690_s16, 4  ;;  %s46_s15 = int_to_ptr.vmem [resolvable:$true] %s45_s15  ;;  %s70_s17 = int_to_ptr.vmem [resolvable:$true] %s69_s17 }
  0x38   :  { %s4584_s20 = scalar_lea.hbm %s5277_s2, 1024 }
  0x39   :  { %p4585_p10 = scmp.ne.s32.totalorder %s5277_s2, %s4584_s20  ;;  %p4588_p11 = scmp.lt.u32.totalorder %s4584_s20, %s5277_s2 }
  0x3b   :  { %p4590_p12 = pnand %p4588_p11, %p4585_p10 }
  0x3d   :  { %4593 = shalt.err (!%p4590_p12)
}
  0x3e   :  { %s4594_s0 = scalar_lea.vmem %s46_s15, 1024  ;;  %p4599_p0 = scmp.lt.s32.totalorder %s46_s15, %s46_s15 }
  0x3f   :  { %p4595_p13 = scmp.ne.s32.totalorder %s46_s15, %s4594_s0  ;;  %p4600_p1 = scmp.lt.s32.totalorder %s4594_s0, %s4594_s0 }
  0x41   :  { %p4601_p2 = por %p4600_p1, %p4599_p0 }
  0x43   :  { %p4602_p3 = pnand %p4601_p2, %p4595_p13 }
  0x45   :  { %4605 = shalt.err (!%p4602_p3)
}
  0x46   :  { %51 = dma.hbm_to_vmem [thread:$0]  %s5277_s2, 1024, %s46_s15, [#allocation6], %s4687_s22, %s4687_s22, %s4688_s23  }
  0x47   :  { %s4606_s29 = scalar_lea.hbm %s5279_s4, 6144 }
  0x48   :  { %p4607_p4 = scmp.ne.s32.totalorder %s5279_s4, %s4606_s29  ;;  %p4610_p5 = scmp.lt.u32.totalorder %s4606_s29, %s5279_s4 }
  0x4a   :  { %p4612_p6 = pnand %p4610_p5, %p4607_p4 }
  0x4c   :  { %4615 = shalt.err (!%p4612_p6)
}
  0x4d   :  { %s4616_s3 = scalar_lea.vmem %s70_s17, 6144  ;;  %p4621_p8 = scmp.lt.s32.totalorder %s70_s17, %s70_s17 }
  0x4e   :  { %p4617_p7 = scmp.ne.s32.totalorder %s70_s17, %s4616_s3  ;;  %p4622_p9 = scmp.lt.s32.totalorder %s4616_s3, %s4616_s3 }
  0x50   :  { %p4623_p10 = por %p4622_p9, %p4621_p8 }
  0x52   :  { %p4624_p11 = pnand %p4623_p10, %p4617_p7 }
  0x54   :  { %4627 = shalt.err (!%p4624_p11)
}
  0x55   :  { %75 = dma.hbm_to_vmem [thread:$0]  %s5279_s4, 6144, %s70_s17, [#allocation9], %s4687_s22, %s4687_s22, %s4688_s23  }
  0x56   :  { %s4691_s13 = smov [#allocation11]   ;;  %s4628_s19 = scalar_lea.hbm %s5280_s5, 96 }
  0x57   :  { %s81_s15 = sshll.u32 %s4691_s13, 4  ;;  %p4629_p12 = scmp.ne.s32.totalorder %s5280_s5, %s4628_s19  ;;  %s82_s15 = int_to_ptr.vmem [resolvable:$true] %s81_s15 }
  0x58   :  { %p4632_p13 = scmp.lt.u32.totalorder %s4628_s19, %s5280_s5 }
  0x5a   :  { %p4634_p0 = pnand %p4632_p13, %p4629_p12 }
  0x5c   :  { %4637 = shalt.err (!%p4634_p0)
}
  0x5d   :  { %s4638_s25 = scalar_lea.vmem %s82_s15, 96  ;;  %p4643_p2 = scmp.lt.s32.totalorder %s82_s15, %s82_s15 }
  0x5e   :  { %p4639_p1 = scmp.ne.s32.totalorder %s82_s15, %s4638_s25  ;;  %p4644_p3 = scmp.lt.s32.totalorder %s4638_s25, %s4638_s25 }
  0x60   :  { %p4645_p4 = por %p4644_p3, %p4643_p2 }
  0x62   :  { %p4646_p5 = pnand %p4645_p4, %p4639_p1 }
  0x64   :  { %4649 = shalt.err (!%p4646_p5)
}
  0x65   :  { %s4692_s4 = smov 16   ;;  %s4693_s22 = smov 1  }
  0x66   :  { %87 = dma.hbm_to_vmem [thread:$0]  %s5280_s5, 96, %s82_s15, [#allocation12], %s4692_s4, %s4692_s4, %s4693_s22  }
  0x67   :  { %4672 = dma.done.wait [#allocation3], 1024  }
  0x68   :  { %4673 = vsyncadd [#allocation3], 4294966272 }
  0x69   :  { %4674 = dma.done.wait [#allocation6], 3072  }
  0x6a   :  { %4675 = vsyncadd [#allocation6], 4294964224 }
  0x6b   :  { %4676 = dma.done.wait [#allocation9], 12288  }
  0x6c   :  { %4677 = vsyncadd [#allocation9], 4294955008 }
  0x6d   :  { %4678 = dma.done.wait [#allocation12], 96  }
  0x6e   :  { %4679 = vsyncadd [#allocation12], 4294967200  ;;  %v4694_v0 = vmov 0   ;;  %v4818_v1 = vld [vmem:[#allocation7] sm:$0xff]   ;;  %v4820_v2 = vld [vmem:[#allocation7 + $0x8] sm:$0xff]   ;;  %s4695_s5 = smov [#allocation13]  }
  0x6f   :  { %4390 = vset.pattern.permute.xlu0 %v4694_v0  ;;  %4391 = vset.pattern.permute.xlu1 %v4694_v0  ;;  %v4825_v3 = vld [vmem:[#allocation7 + $0x10] sm:$0xff]   ;;  %v4828_v4 = vld [vmem:[#allocation7 + $0x18] sm:$0xff]   ;;  %v4831_v5 = vld [vmem:[#allocation2] sm:$0xff]   ;;  %s3283_s0 = sshll.u32 %s4695_s5, 4  ;;  %s3284_s0 = int_to_ptr.vmem [resolvable:$true] %s3283_s0 }
  0x70   :  { %3704 = vmatprep.subr.bf16.mxu1 %v4818_v1  ;;  %3720 = vmatprep.mubr.bf16.mxu1 %v4831_v5  ;;  %v4837_v6 = vld [vmem:[#allocation7 + $0x20] sm:$0xff]   ;;  %v4841_v7 = vld [vmem:[#allocation7 + $0x28] sm:$0xff]   ;;  %v125_v9 = vld [vmem:[#allocation5 + $0x10] sm:$0xff]  ;;  %s4650_s14 = scalar_lea.vmem %s3284_s0, 2048  ;;  %p4655_p7 = scmp.lt.s32.totalorder %s3284_s0, %s3284_s0 }
  0x71   :  { %3705 = vmatpush3.bf16.msra.mxu1 %v4818_v1  ;;  %3816 = vmatprep.mubr.bf16.mxu0 %v4831_v5  ;;  %v123_v8 = vld [vmem:[#allocation5] sm:$0xff]  ;;  %v124_v10 = vld [vmem:[#allocation5 + $0x8] sm:$0xff]  ;;  %v126_v11 = vld [vmem:[#allocation5 + $0x18] sm:$0xff]  ;;  %p4651_p6 = scmp.ne.s32.totalorder %s3284_s0, %s4650_s14  ;;  %p4656_p8 = scmp.lt.s32.totalorder %s4650_s14, %s4650_s14 }
  0x72   :  { %3706 = vmatprep.subr.bf16.mxu1 %v4820_v2  ;;  %350 = vperm.xlu0 %4390, %v123_v8   ;;  %v4845_v12 = vld [vmem:[#allocation7 + $0x30] sm:$0xff]   ;;  %v127_v13 = vld [vmem:[#allocation5 + $0x20] sm:$0xff]  ;;  %v4847_v14 = vld [vmem:[#allocation7 + $0x38] sm:$0xff]  }
  0x73   :  { %360 = vperm.xlu1 %4391, %v125_v9   ;;  %v128_v15 = vld [vmem:[#allocation5 + $0x28] sm:$0xff]  ;;  %v129_v16 = vld [vmem:[#allocation5 + $0x30] sm:$0xff]  ;;  %v130_v17 = vld [vmem:[#allocation5 + $0x38] sm:$0xff]  ;;  %p4657_p9 = por %p4656_p8, %p4655_p7 }
  0x74   :  { %v4853_v18 = vld [vmem:[#allocation2 + $0x8] sm:$0xff]   ;;  %v131_v19 = vld [vmem:[#allocation5 + $0x40] sm:$0xff]  ;;  %v4855_v22 = vld [vmem:[#allocation2 + $0x10] sm:$0xff]  }
  0x75   :  { %3707 = vmatpush3.bf16.msra.mxu1 %v4820_v2  ;;  %v132_v20 = vld [vmem:[#allocation5 + $0x48] sm:$0xff]  ;;  %v4408_v21 = vld [vmem:[#allocation10] sm:$0xff]   ;;  %v133_v23 = vld [vmem:[#allocation5 + $0x50] sm:$0xff]  ;;  %p4658_p10 = pnand %p4657_p9, %p4651_p6 }
  0x76   :  { %3708 = vmatprep.subr.bf16.mxu1 %v4825_v3  ;;  %355 = vperm.xlu0 %4390, %v124_v10   ;;  %v134_v24 = vld [vmem:[#allocation5 + $0x58] sm:$0xff]  ;;  %v4409_v25 = vld [vmem:[#allocation10 + $0x8] sm:$0xff]   ;;  %v135_v27 = vld [vmem:[#allocation5 + $0x60] sm:$0xff] }
  0x77   :  { %365 = vperm.xlu1 %4391, %v126_v11   ;;  %v4860_v26 = vld [vmem:[#allocation2 + $0x18] sm:$0xff]   ;;  %v136_v28 = vld [vmem:[#allocation5 + $0x68] sm:$0xff]  ;;  %v4410_v29 = vld [vmem:[#allocation10 + $0x10] sm:$0xff]  }
  0x78   :  { %v4862_v30 = vld [vmem:[#allocation2 + $0x20] sm:$0xff]   ;;  %v137_v31 = vld [vmem:[#allocation5 + $0x70] sm:$0xff]  ;;  %v138_v32 = vld [vmem:[#allocation5 + $0x78] sm:$0xff] }
  0x79   :  { %3709 = vmatpush3.bf16.msra.mxu1 %v4825_v3  ;;  %v4411_v33 = vld [vmem:[#allocation10 + $0x18] sm:$0xff]   ;;  %v4412_v34 = vld [vmem:[#allocation10 + $0x20] sm:$0xff]   ;;  %v4866_v35 = vld [vmem:[#allocation2 + $0x28] sm:$0xff]  }
  0x7a   :  { %3710 = vmatprep.subr.bf16.mxu1 %v4828_v4  ;;  %370 = vperm.xlu0 %4390, %v127_v13   ;;  %v4868_v36 = vld [vmem:[#allocation2 + $0x30] sm:$0xff]   ;;  %v4413_v37 = vld [vmem:[#allocation10 + $0x28] sm:$0xff]   ;;  %v4872_v38 = vld [vmem:[#allocation2 + $0x38] sm:$0xff]  }
  0x7b   :  { %375 = vperm.xlu1 %4391, %v128_v15   ;;  %v4414_v39 = vld [vmem:[#allocation10 + $0x30] sm:$0xff]   ;;  %v4415_v40 = vld [vmem:[#allocation10 + $0x38] sm:$0xff]   ;;  %v4416_v41 = vld [vmem:[#allocation8] sm:$0xff]  }
  0x7c   :  { %v4417_v61 = vld [vmem:[#allocation8 + $0x8] sm:$0xff]   ;;  %v4418_v13 = vld [vmem:[#allocation8 + $0x10] sm:$0xff]  }
  0x7d   :  { %3711 = vmatpush3.bf16.msra.mxu1 %v4828_v4 }
  0x7e   :  { %3712 = vmatprep.subr.bf16.mxu1 %v4837_v6  ;;  %380 = vperm.xlu0 %4390, %v129_v16  }
  0x7f   :  { %385 = vperm.xlu1 %4391, %v130_v17  }
  0x81   :  { %3713 = vmatpush3.bf16.msra.mxu1 %v4837_v6 }
  0x82   :  { %3714 = vmatprep.subr.bf16.mxu1 %v4841_v7  ;;  %390 = vperm.xlu0 %4390, %v131_v19  }
  0x83   :  { %395 = vperm.xlu1 %4391, %v132_v20  }
  0x85   :  { %3715 = vmatpush3.bf16.msra.mxu1 %v4841_v7 }
  0x86   :  { %3716 = vmatprep.subr.bf16.mxu1 %v4845_v12  ;;  %400 = vperm.xlu0 %4390, %v133_v23   ;;  %v4419_v23 = vld [vmem:[#allocation8 + $0x18] sm:$0xff]  }
  0x87   :  { %405 = vperm.xlu1 %4391, %v134_v24  }
  0x89   :  { %3717 = vmatpush3.bf16.msra.mxu1 %v4845_v12 }
  0x8a   :  { %3718 = vmatprep.subr.bf16.mxu1 %v4847_v14  ;;  %410 = vperm.xlu0 %4390, %v135_v27  }
  0x8b   :  { %415 = vperm.xlu1 %4391, %v136_v28  }
  0x8d   :  { %3719 = vmatpush3.bf16.msra.mxu1 %v4847_v14 }
  0x8e   :  { %3736 = vmatprep.subr.bf16.mxu1 %v4408_v21  ;;  %420 = vperm.xlu0 %4390, %v137_v31  }
  0x8f   :  { %425 = vperm.xlu1 %4391, %v138_v32  }
  0x90   :  { %3721 = vmatmul.mubr.bf16.vlgmr.msra.gmra.mrb[0].mxu1 %v4853_v18 }
  0x91   :  { %3724 = vmatprep.mubr.bf16.mxu1 %v4855_v22  ;;  %3737 = vmatpush3.bf16.msra.mxu1 %v4408_v21 }
  0x92   :  { %3738 = vmatprep.subr.bf16.mxu1 %v4409_v25 }
  0x95   :  { %3739 = vmatpush3.bf16.msra.mxu1 %v4409_v25 }
  0x96   :  { %3740 = vmatprep.subr.bf16.mxu1 %v4410_v29 }
  0x98   :  { %3725 = vmatmul.mubr.bf16.gmra.mrb[4].mxu1 %v4860_v26 }
  0x99   :  { %3728 = vmatprep.mubr.bf16.mxu1 %v4862_v30  ;;  %3741 = vmatpush3.bf16.msra.mxu1 %v4410_v29 }
  0x9a   :  { %3742 = vmatprep.subr.bf16.mxu1 %v4411_v33 }
  0x9d   :  { %3743 = vmatpush3.bf16.msra.mxu1 %v4411_v33  ;;  %v4420_v33 = vld [vmem:[#allocation8 + $0x20] sm:$0xff]  }
  0x9e   :  { %3744 = vmatprep.subr.bf16.mxu1 %v4412_v34 }
  0xa0   :  { %3729 = vmatmul.mubr.bf16.gmra.mrb[8].mxu1 %v4866_v35 }
  0xa1   :  { %3732 = vmatprep.mubr.bf16.mxu1 %v4868_v36  ;;  %3745 = vmatpush3.bf16.msra.mxu1 %v4412_v34 }
  0xa2   :  { %3746 = vmatprep.subr.bf16.mxu1 %v4413_v37 }
  0xa5   :  { %3747 = vmatpush3.bf16.msra.mxu1 %v4413_v37 }
  0xa6   :  { %3748 = vmatprep.subr.bf16.mxu1 %v4414_v39 }
  0xa8   :  { %3733 = vmatmul.mubr.bf16.gmra.mrb[12].mxu1 %v4872_v38 }
  0xa9   :  { %3749 = vmatpush3.bf16.msra.mxu1 %v4414_v39 }
  0xaa   :  { %3750 = vmatprep.subr.bf16.mxu1 %v4415_v40 }
  0xad   :  { %3751 = vmatpush3.bf16.msra.mxu1 %v4415_v40 }
  0xae   :  { %3768 = vmatprep.subr.bf16.mxu1 %v4416_v41 }
  0xf1   :  { %v4875_v42 = vpop.permute.xlu0 %350 }
  0xf2   :  { %v4877_v43 = vpop.permute.xlu1 %360 }
  0xf5   :  { %v4879_v44 = vpop.permute.xlu0 %355 }
  0xf6   :  { %v4881_v45 = vpop.permute.xlu1 %365 }
  0xf9   :  { %v4883_v46 = vpop.permute.xlu0 %370 }
  0xfa   :  { %v4885_v47 = vpop.permute.xlu1 %375 }
  0xfd   :  { %v4887_v49 = vpop.permute.xlu0 %380 }
  0xfe   :  { %v4889_v51 = vpop.permute.xlu1 %385 }
 0x101   :  { %v4895_v60 = vpop.permute.xlu0 %390 }
 0x102   :  { %v4897_v62 = vpop.permute.xlu1 %395 }
 0x105   :  { %v4903_v17 = vpop.permute.xlu0 %400 }
 0x106   :  { %v4905_v20 = vpop.permute.xlu1 %405 }
 0x109   :  { %v4907_v28 = vpop.permute.xlu0 %410 }
 0x10a   :  { %v4911_v34 = vpop.permute.xlu1 %415 }
 0x163   :  { %v3722_v48 = vpop.f32.mrb[0].mxu1 }
 0x164   :  { %v285_v50 = vpop.f32.mrb[1].mxu1  ;;  %v430_v53 = vmul.f32 %v3722_v48, %v4877_v43  ;;  %v4421_v48 = vld [vmem:[#allocation8 + $0x28] sm:$0xff]  }
 0x165   :  { %v3723_v52 = vpop.f32.mrb[2].mxu1  ;;  %v428_v56 = vmul.f32 %v4875_v42, %v285_v50 }
 0x166   :  { %v431_v54 = vmul.f32 %v3723_v52, %v4881_v45  ;;  %v288_v55 = vpop.f32.mrb[3].mxu1  ;;  %v4915_v52 = vpop.permute.xlu0 %420 }
 0x167   :  { %v429_v57 = vmul.f32 %v4879_v44, %v288_v55 }
 0x168   :  { %v445_v58 = vpack.c.bf16 %v431_v54, %v430_v53  ;;  %v4917_v54 = vpop.permute.xlu1 %425 }
 0x169   :  { %v444_v59 = vpack.c.bf16 %v429_v57, %v428_v56 }
 0x16b   :  { %v3726_v63 = vpop.f32.mrb[4].mxu1  ;;  %3752 = vmatprep.mubr.bf16.mxu1 %v444_v59  ;;  %v4422_v59 = vld [vmem:[#allocation8 + $0x30] sm:$0xff]  }
 0x16c   :  { %v301_v0 = vpop.f32.mrb[5].mxu1  ;;  %3753 = vmatmul.mubr.bf16.vlgmr.msra.gmra.mrb[16].mxu1 %v445_v58  ;;  %v434_v9 = vmul.f32 %v3726_v63, %v4887_v49 }
 0x16d   :  { %v3727_v8 = vpop.f32.mrb[6].mxu1  ;;  %3769 = vmatpush3.bf16.msra.mxu1 %v4416_v41  ;;  %v432_v15 = vmul.f32 %v4883_v46, %v301_v0 }
 0x16e   :  { %v435_v10 = vmul.f32 %v3727_v8, %v4889_v51  ;;  %v304_v11 = vpop.f32.mrb[7].mxu1  ;;  %3770 = vmatprep.subr.bf16.mxu1 %v4417_v61 }
 0x16f   :  { %v433_v16 = vmul.f32 %v4885_v47, %v304_v11 }
 0x170   :  { %v447_v19 = vpack.c.bf16 %v435_v10, %v434_v9  ;;  %v4423_v9 = vld [vmem:[#allocation8 + $0x38] sm:$0xff]   ;;  %v3330_v10 = vld [vmem:[#allocation11] ss:$0 sm:$0xff] }
 0x171   :  { %v446_v21 = vpack.c.bf16 %v433_v16, %v432_v15  ;;  %3771 = vmatpush3.bf16.msra.mxu1 %v4417_v61 }
 0x172   :  { %3772 = vmatprep.subr.bf16.mxu1 %v4418_v13 }
 0x173   :  { %v3730_v24 = vpop.f32.mrb[8].mxu1  ;;  %3756 = vmatprep.mubr.bf16.mxu1 %v446_v21 }
 0x174   :  { %v317_v25 = vpop.f32.mrb[9].mxu1  ;;  %3757 = vmatmul.mubr.bf16.gmra.mrb[20].mxu1 %v447_v19  ;;  %v438_v29 = vmul.f32 %v3730_v24, %v4903_v17 }
 0x175   :  { %v3731_v27 = vpop.f32.mrb[10].mxu1  ;;  %3773 = vmatpush3.bf16.msra.mxu1 %v4418_v13  ;;  %v436_v37 = vmul.f32 %v4895_v60, %v317_v25 }
 0x176   :  { %v439_v31 = vmul.f32 %v3731_v27, %v4905_v20  ;;  %v320_v32 = vpop.f32.mrb[11].mxu1  ;;  %3774 = vmatprep.subr.bf16.mxu1 %v4419_v23 }
 0x177   :  { %v437_v39 = vmul.f32 %v4897_v62, %v320_v32 }
 0x178   :  { %v449_v40 = vpack.c.bf16 %v439_v31, %v438_v29 }
 0x179   :  { %v448_v41 = vpack.c.bf16 %v437_v39, %v436_v37  ;;  %3775 = vmatpush3.bf16.msra.mxu1 %v4419_v23 }
 0x17a   :  { %3776 = vmatprep.subr.bf16.mxu1 %v4420_v33 }
 0x17b   :  { %v3734_v50 = vpop.f32.mrb[12].mxu1  ;;  %3760 = vmatprep.mubr.bf16.mxu1 %v448_v41 }
 0x17c   :  { %v333_v53 = vpop.f32.mrb[13].mxu1  ;;  %3761 = vmatmul.mubr.bf16.gmra.mrb[24].mxu1 %v449_v40  ;;  %v442_v56 = vmul.f32 %v3734_v50, %v4915_v52 }
 0x17d   :  { %v3735_v55 = vpop.f32.mrb[14].mxu1  ;;  %3777 = vmatpush3.bf16.msra.mxu1 %v4420_v33  ;;  %v440_v61 = vmul.f32 %v4907_v28, %v333_v53 }
 0x17e   :  { %v443_v57 = vmul.f32 %v3735_v55, %v4917_v54  ;;  %v336_v58 = vpop.f32.mrb[15].mxu1  ;;  %3778 = vmatprep.subr.bf16.mxu1 %v4421_v48 }
 0x17f   :  { %v441_v63 = vmul.f32 %v4911_v34, %v336_v58 }
 0x180   :  { %v451_v0 = vpack.c.bf16 %v443_v57, %v442_v56 }
 0x181   :  { %v450_v8 = vpack.c.bf16 %v441_v63, %v440_v61  ;;  %3779 = vmatpush3.bf16.msra.mxu1 %v4421_v48 }
 0x182   :  { %3780 = vmatprep.subr.bf16.mxu1 %v4422_v59 }
 0x183   :  { %3764 = vmatprep.mubr.bf16.mxu1 %v450_v8 }
 0x184   :  { %3765 = vmatmul.mubr.bf16.gmra.mrb[28].mxu1 %v451_v0 }
 0x185   :  { %3781 = vmatpush3.bf16.msra.mxu1 %v4422_v59  ;;  %3784 = vmatprep.mubr.bf16.mxu1 %v4818_v1 }
 0x186   :  { %3782 = vmatprep.subr.bf16.mxu1 %v4423_v9 }
 0x189   :  { %3783 = vmatpush3.bf16.msra.mxu1 %v4423_v9 }
 0x18c   :  { %3785 = vmatmul.mubr.bf16.vlgmr.msra.gmra.mrb[16].mxu1 %v4820_v2 }
 0x18d   :  { %3788 = vmatprep.mubr.bf16.mxu1 %v4825_v3 }
 0x194   :  { %3789 = vmatmul.mubr.bf16.gmra.mrb[20].mxu1 %v4828_v4 }
 0x195   :  { %3792 = vmatprep.mubr.bf16.mxu1 %v4837_v6 }
 0x19c   :  { %3793 = vmatmul.mubr.bf16.gmra.mrb[24].mxu1 %v4841_v7 }
 0x19d   :  { %3796 = vmatprep.mubr.bf16.mxu1 %v4845_v12 }
 0x1a4   :  { %3797 = vmatmul.mubr.bf16.gmra.mrb[28].mxu1 %v4847_v14 }
 0x1a5   :  { %3912 = vmatprep.mubr.bf16.mxu1 %v4831_v5 }
 0x25f   :  { %v3786_v1 = vpop.f32.mrb[16].mxu1 }
 0x260   :  { %v783_v11 = vadd.f32 %v3786_v1, %v3330_v10  ;;  %v711_v13 = vpop.f32.mrb[17].mxu1 }
 0x261   :  { %v781_v15 = vadd.f32 %v3330_v10, %v711_v13  ;;  %v3787_v2 = vpop.f32.mrb[18].mxu1 }
 0x262   :  { %v784_v16 = vadd.f32 %v3787_v2, %v3330_v10  ;;  %v714_v3 = vpop.f32.mrb[19].mxu1  ;;  %v799_v4 = vmax.f32 %v783_v11, 0.0 }
 0x263   :  { %v782_v19 = vadd.f32 %v3330_v10, %v714_v3  ;;  %v797_v6 = vmax.f32 %v781_v15, 0.0 }
 0x264   :  { %v800_v21 = vmax.f32 %v784_v16, 0.0 }
 0x265   :  { %v798_v23 = vmax.f32 %v782_v19, 0.0 }
 0x266   :  { %v4932_v7 = vpack.c.bf16 %v800_v21, %v799_v4 }
 0x267   :  { %v4934_v12 = vpack.c.bf16 %v798_v23, %v797_v6  ;;  %v3790_v14 = vpop.f32.mrb[20].mxu1 }
 0x268   :  { %v787_v24 = vadd.f32 %v3790_v14, %v3330_v10  ;;  %v727_v5 = vpop.f32.mrb[21].mxu1 }
 0x269   :  { %v785_v25 = vadd.f32 %v3330_v10, %v727_v5  ;;  %v3791_v27 = vpop.f32.mrb[22].mxu1  ;;  %3800 = vmatprep.subr.bf16.mxu0 %v4934_v12 }
 0x26a   :  { %v788_v29 = vadd.f32 %v3791_v27, %v3330_v10  ;;  %v730_v31 = vpop.f32.mrb[23].mxu1  ;;  %3801 = vmatpush3.bf16.msra.mxu0 %v4934_v12  ;;  %v803_v33 = vmax.f32 %v787_v24, 0.0  ;;  %v4424_v27 = vld [vmem:[#allocation10 + $0x40] sm:$0xff]  }
 0x26b   :  { %v786_v32 = vadd.f32 %v3330_v10, %v730_v31  ;;  %3802 = vmatprep.subr.bf16.mxu0 %v4932_v7  ;;  %v801_v39 = vmax.f32 %v785_v25, 0.0  ;;  %v4427_v31 = vld [vmem:[#allocation10 + $0x58] sm:$0xff]  }
 0x26c   :  { %v804_v37 = vmax.f32 %v788_v29, 0.0  ;;  %v4426_v29 = vld [vmem:[#allocation10 + $0x50] sm:$0xff]  }
 0x26d   :  { %v802_v40 = vmax.f32 %v786_v32, 0.0  ;;  %v4428_v32 = vld [vmem:[#allocation10 + $0x60] sm:$0xff]  }
 0x26e   :  { %v4939_v41 = vpack.c.bf16 %v804_v37, %v803_v33  ;;  %3803 = vmatpush3.bf16.msra.mxu0 %v4932_v7  ;;  %v4429_v33 = vld [vmem:[#allocation10 + $0x68] sm:$0xff]  }
 0x26f   :  { %v4942_v48 = vpack.c.bf16 %v802_v40, %v801_v39  ;;  %v3794_v50 = vpop.f32.mrb[24].mxu1 }
 0x270   :  { %v791_v53 = vadd.f32 %v3794_v50, %v3330_v10  ;;  %v743_v55 = vpop.f32.mrb[25].mxu1 }
 0x271   :  { %v789_v56 = vadd.f32 %v3330_v10, %v743_v55  ;;  %v3795_v57 = vpop.f32.mrb[26].mxu1  ;;  %3804 = vmatprep.subr.bf16.mxu0 %v4942_v48 }
 0x272   :  { %v792_v58 = vadd.f32 %v3795_v57, %v3330_v10  ;;  %v746_v59 = vpop.f32.mrb[27].mxu1  ;;  %3805 = vmatpush3.bf16.msra.mxu0 %v4942_v48  ;;  %v807_v63 = vmax.f32 %v791_v53, 0.0  ;;  %v4433_v57 = vld [vmem:[#allocation8 + $0x48] sm:$0xff]  }
 0x273   :  { %v790_v61 = vadd.f32 %v3330_v10, %v746_v59  ;;  %3806 = vmatprep.subr.bf16.mxu0 %v4939_v41  ;;  %v805_v8 = vmax.f32 %v789_v56, 0.0 }
 0x274   :  { %v808_v0 = vmax.f32 %v792_v58, 0.0 }
 0x275   :  { %v806_v9 = vmax.f32 %v790_v61, 0.0 }
 0x276   :  { %v4947_v1 = vpack.c.bf16 %v808_v0, %v807_v63  ;;  %3807 = vmatpush3.bf16.msra.mxu0 %v4939_v41 }
 0x277   :  { %v4950_v11 = vpack.c.bf16 %v806_v9, %v805_v8  ;;  %v3798_v13 = vpop.f32.mrb[28].mxu1  ;;  %v4434_v9 = vld [vmem:[#allocation8 + $0x50] sm:$0xff]  }
 0x278   :  { %v795_v15 = vadd.f32 %v3798_v13, %v3330_v10  ;;  %v759_v2 = vpop.f32.mrb[29].mxu1 }
 0x279   :  { %v793_v16 = vadd.f32 %v3330_v10, %v759_v2  ;;  %v3799_v3 = vpop.f32.mrb[30].mxu1  ;;  %3808 = vmatprep.subr.bf16.mxu0 %v4950_v11 }
 0x27a   :  { %v796_v19 = vadd.f32 %v3799_v3, %v3330_v10  ;;  %v762_v4 = vpop.f32.mrb[31].mxu1  ;;  %3809 = vmatpush3.bf16.msra.mxu0 %v4950_v11  ;;  %v811_v6 = vmax.f32 %v795_v15, 0.0  ;;  %v4435_v3 = vld [vmem:[#allocation8 + $0x58] sm:$0xff]  }
 0x27b   :  { %v794_v21 = vadd.f32 %v3330_v10, %v762_v4  ;;  %3810 = vmatprep.subr.bf16.mxu0 %v4947_v1  ;;  %v809_v14 = vmax.f32 %v793_v16, 0.0  ;;  %v4425_v10 = vld [vmem:[#allocation10 + $0x48] sm:$0xff]  }
 0x27c   :  { %v812_v23 = vmax.f32 %v796_v19, 0.0 }
 0x27d   :  { %v810_v24 = vmax.f32 %v794_v21, 0.0 }
 0x27e   :  { %v4955_v5 = vpack.c.bf16 %v812_v23, %v811_v6  ;;  %3811 = vmatpush3.bf16.msra.mxu0 %v4947_v1 }
 0x27f   :  { %v4958_v25 = vpack.c.bf16 %v810_v24, %v809_v14  ;;  %v4436_v24 = vld [vmem:[#allocation8 + $0x60] sm:$0xff]  }
 0x281   :  { %3812 = vmatprep.subr.bf16.mxu0 %v4958_v25 }
 0x282   :  { %3813 = vmatpush3.bf16.msra.mxu0 %v4958_v25 }
 0x283   :  { %3814 = vmatprep.subr.bf16.mxu0 %v4955_v5 }
 0x286   :  { %3815 = vmatpush3.bf16.msra.mxu0 %v4955_v5 }
 0x287   :  { %3832 = vmatprep.subr.bf16.mxu0 %v4424_v27 }
 0x289   :  { %3817 = vmatmul.mubr.bf16.vlgmr.msra.gmra.mrb[0].mxu0 %v4853_v18  ;;  %v4430_v18 = vld [vmem:[#allocation10 + $0x70] sm:$0xff]  }
 0x28a   :  { %3820 = vmatprep.mubr.bf16.mxu0 %v4855_v22  ;;  %3833 = vmatpush3.bf16.msra.mxu0 %v4424_v27  ;;  %v4431_v22 = vld [vmem:[#allocation10 + $0x78] sm:$0xff]  }
 0x28b   :  { %3834 = vmatprep.subr.bf16.mxu0 %v4425_v10 }
 0x28e   :  { %3835 = vmatpush3.bf16.msra.mxu0 %v4425_v10 }
 0x28f   :  { %3836 = vmatprep.subr.bf16.mxu0 %v4426_v29 }
 0x291   :  { %3821 = vmatmul.mubr.bf16.gmra.mrb[4].mxu0 %v4860_v26  ;;  %v4432_v26 = vld [vmem:[#allocation8 + $0x40] sm:$0xff]  }
 0x292   :  { %3824 = vmatprep.mubr.bf16.mxu0 %v4862_v30  ;;  %3837 = vmatpush3.bf16.msra.mxu0 %v4426_v29 }
 0x293   :  { %3838 = vmatprep.subr.bf16.mxu0 %v4427_v31 }
 0x296   :  { %3839 = vmatpush3.bf16.msra.mxu0 %v4427_v31 }
 0x297   :  { %3840 = vmatprep.subr.bf16.mxu0 %v4428_v32 }
 0x299   :  { %3825 = vmatmul.mubr.bf16.gmra.mrb[8].mxu0 %v4866_v35 }
 0x29a   :  { %3828 = vmatprep.mubr.bf16.mxu0 %v4868_v36  ;;  %3841 = vmatpush3.bf16.msra.mxu0 %v4428_v32  ;;  %v4437_v32 = vld [vmem:[#allocation8 + $0x68] sm:$0xff]  }
 0x29b   :  { %3842 = vmatprep.subr.bf16.mxu0 %v4429_v33 }
 0x29e   :  { %3843 = vmatpush3.bf16.msra.mxu0 %v4429_v33 }
 0x29f   :  { %3844 = vmatprep.subr.bf16.mxu0 %v4430_v18 }
 0x2a1   :  { %3829 = vmatmul.mubr.bf16.gmra.mrb[12].mxu0 %v4872_v38 }
 0x2a2   :  { %3845 = vmatpush3.bf16.msra.mxu0 %v4430_v18 }
 0x2a3   :  { %3846 = vmatprep.subr.bf16.mxu0 %v4431_v22 }
 0x2a6   :  { %3847 = vmatpush3.bf16.msra.mxu0 %v4431_v22 }
 0x2a7   :  { %3864 = vmatprep.subr.bf16.mxu0 %v4432_v26 }
 0x35c   :  { %v3818_v30 = vpop.f32.mrb[0].mxu0 }
 0x35d   :  { %v855_v37 = vpop.f32.mrb[1].mxu0  ;;  %v920_v35 = vmul.f32 %v3818_v30, %v4877_v43 }
 0x35e   :  { %v3819_v39 = vpop.f32.mrb[2].mxu0  ;;  %v918_v50 = vmul.f32 %v855_v37, %v4875_v42 }
 0x35f   :  { %v921_v36 = vmul.f32 %v3819_v39, %v4881_v45  ;;  %v858_v40 = vpop.f32.mrb[3].mxu0  ;;  %v4438_v39 = vld [vmem:[#allocation8 + $0x70] sm:$0xff]  }
 0x360   :  { %v919_v53 = vmul.f32 %v858_v40, %v4879_v44 }
 0x361   :  { %v935_v55 = vpack.c.bf16 %v921_v36, %v920_v35 }
 0x362   :  { %v934_v56 = vpack.c.bf16 %v919_v53, %v918_v50  ;;  %v4439_v53 = vld [vmem:[#allocation8 + $0x78] sm:$0xff]  }
 0x364   :  { %v3822_v58 = vpop.f32.mrb[4].mxu0  ;;  %3848 = vmatprep.mubr.bf16.mxu0 %v934_v56 }
 0x365   :  { %v871_v59 = vpop.f32.mrb[5].mxu0  ;;  %3849 = vmatmul.mubr.bf16.vlgmr.msra.gmra.mrb[16].mxu0 %v935_v55  ;;  %v924_v63 = vmul.f32 %v3822_v58, %v4887_v49  ;;  %v4995_v55 = vld [vmem:[#allocation2] sm:$0xff]  }
 0x366   :  { %v3823_v61 = vpop.f32.mrb[6].mxu0  ;;  %3865 = vmatpush3.bf16.msra.mxu0 %v4432_v26  ;;  %v922_v13 = vmul.f32 %v871_v59, %v4883_v46 }
 0x367   :  { %v925_v0 = vmul.f32 %v3823_v61, %v4889_v51  ;;  %v874_v8 = vpop.f32.mrb[7].mxu0  ;;  %3866 = vmatprep.subr.bf16.mxu0 %v4433_v57 }
 0x368   :  { %v923_v15 = vmul.f32 %v874_v8, %v4885_v47 }
 0x369   :  { %v937_v2 = vpack.c.bf16 %v925_v0, %v924_v63 }
 0x36a   :  { %v936_v16 = vpack.c.bf16 %v923_v15, %v922_v13  ;;  %3867 = vmatpush3.bf16.msra.mxu0 %v4433_v57 }
 0x36b   :  { %3868 = vmatprep.subr.bf16.mxu0 %v4434_v9 }
 0x36c   :  { %v3826_v19 = vpop.f32.mrb[8].mxu0  ;;  %3852 = vmatprep.mubr.bf16.mxu0 %v936_v16 }
 0x36d   :  { %v887_v4 = vpop.f32.mrb[9].mxu0  ;;  %3853 = vmatmul.mubr.bf16.gmra.mrb[20].mxu0 %v937_v2  ;;  %v928_v6 = vmul.f32 %v3826_v19, %v4903_v17 }
 0x36e   :  { %v3827_v21 = vpop.f32.mrb[10].mxu0  ;;  %3869 = vmatpush3.bf16.msra.mxu0 %v4434_v9  ;;  %v926_v27 = vmul.f32 %v887_v4, %v4895_v60 }
 0x36f   :  { %v929_v23 = vmul.f32 %v3827_v21, %v4905_v20  ;;  %v890_v14 = vpop.f32.mrb[11].mxu0  ;;  %3870 = vmatprep.subr.bf16.mxu0 %v4435_v3 }
 0x370   :  { %v927_v10 = vmul.f32 %v890_v14, %v4897_v62 }
 0x371   :  { %v939_v29 = vpack.c.bf16 %v929_v23, %v928_v6 }
 0x372   :  { %v938_v31 = vpack.c.bf16 %v927_v10, %v926_v27  ;;  %3871 = vmatpush3.bf16.msra.mxu0 %v4435_v3 }
 0x373   :  { %3872 = vmatprep.subr.bf16.mxu0 %v4436_v24 }
 0x374   :  { %v3830_v33 = vpop.f32.mrb[12].mxu0  ;;  %3856 = vmatprep.mubr.bf16.mxu0 %v938_v31 }
 0x375   :  { %v903_v18 = vpop.f32.mrb[13].mxu0  ;;  %3857 = vmatmul.mubr.bf16.gmra.mrb[24].mxu0 %v939_v29  ;;  %v932_v26 = vmul.f32 %v3830_v33, %v4915_v52 }
 0x376   :  { %v3831_v22 = vpop.f32.mrb[14].mxu0  ;;  %3873 = vmatpush3.bf16.msra.mxu0 %v4436_v24  ;;  %v930_v35 = vmul.f32 %v903_v18, %v4907_v28 }
 0x377   :  { %v933_v30 = vmul.f32 %v3831_v22, %v4917_v54  ;;  %v906_v37 = vpop.f32.mrb[15].mxu0  ;;  %3874 = vmatprep.subr.bf16.mxu0 %v4437_v32 }
 0x378   :  { %v931_v36 = vmul.f32 %v906_v37, %v4911_v34 }
 0x379   :  { %v941_v40 = vpack.c.bf16 %v933_v30, %v932_v26 }
 0x37a   :  { %v940_v50 = vpack.c.bf16 %v931_v36, %v930_v35  ;;  %3875 = vmatpush3.bf16.msra.mxu0 %v4437_v32 }
 0x37b   :  { %3876 = vmatprep.subr.bf16.mxu0 %v4438_v39 }
 0x37c   :  { %3860 = vmatprep.mubr.bf16.mxu0 %v940_v50 }
 0x37d   :  { %3861 = vmatmul.mubr.bf16.gmra.mrb[28].mxu0 %v941_v40 }
 0x37e   :  { %3877 = vmatpush3.bf16.msra.mxu0 %v4438_v39  ;;  %3880 = vmatprep.mubr.bf16.mxu0 %v4934_v12  ;;  %v3347_v12 = vld [vmem:[#allocation11 + $0x1] ss:$0 sm:$0xff] }
 0x37f   :  { %3878 = vmatprep.subr.bf16.mxu0 %v4439_v53 }
 0x382   :  { %3879 = vmatpush3.bf16.msra.mxu0 %v4439_v53 }
 0x385   :  { %3881 = vmatmul.mubr.bf16.vlgmr.msra.gmra.mrb[16].mxu0 %v4932_v7 }
 0x386   :  { %3884 = vmatprep.mubr.bf16.mxu0 %v4942_v48 }
 0x38d   :  { %3885 = vmatmul.mubr.bf16.gmra.mrb[20].mxu0 %v4939_v41 }
 0x38e   :  { %3888 = vmatprep.mubr.bf16.mxu0 %v4950_v11 }
 0x395   :  { %3889 = vmatmul.mubr.bf16.gmra.mrb[24].mxu0 %v4947_v1 }
 0x396   :  { %3892 = vmatprep.mubr.bf16.mxu0 %v4958_v25 }
 0x39d   :  { %3893 = vmatmul.mubr.bf16.gmra.mrb[28].mxu0 %v4955_v5 }
 0x39e   :  { %4008 = vmatprep.mubr.bf16.mxu0 %v4995_v55 }
 0x458   :  { %v3882_v56 = vpop.f32.mrb[16].mxu0 }
 0x459   :  { %v1276_v57 = vadd.f32 %v3882_v56, %v3347_v12  ;;  %v1203_v7 = vpop.f32.mrb[17].mxu0 }
 0x45a   :  { %v1274_v58 = vadd.f32 %v3347_v12, %v1203_v7  ;;  %v3883_v48 = vpop.f32.mrb[18].mxu0 }
 0x45b   :  { %v1277_v59 = vadd.f32 %v3883_v48, %v3347_v12  ;;  %v1206_v41 = vpop.f32.mrb[19].mxu0  ;;  %v1292_v11 = vmax.f32 %v1276_v57, 0.0 }
 0x45c   :  { %v1275_v61 = vadd.f32 %v3347_v12, %v1206_v41  ;;  %v1290_v1 = vmax.f32 %v1274_v58, 0.0 }
 0x45d   :  { %v1293_v63 = vmax.f32 %v1277_v59, 0.0 }
 0x45e   :  { %v1291_v0 = vmax.f32 %v1275_v61, 0.0 }
 0x45f   :  { %v4998_v25 = vpack.c.bf16 %v1293_v63, %v1292_v11 }
 0x460   :  { %v5000_v5 = vpack.c.bf16 %v1291_v0, %v1290_v1  ;;  %v3886_v8 = vpop.f32.mrb[20].mxu0  ;;  %v4440_v0 = vld [vmem:[#allocation10 + $0x80] sm:$0xff]  }
 0x461   :  { %v1280_v9 = vadd.f32 %v3886_v8, %v3347_v12  ;;  %v1219_v13 = vpop.f32.mrb[21].mxu0  ;;  %v5030_v8 = vld [vmem:[#allocation2 + $0x8] sm:$0xff]  }
 0x462   :  { %v1278_v15 = vadd.f32 %v3347_v12, %v1219_v13  ;;  %v3887_v2 = vpop.f32.mrb[22].mxu0  ;;  %3896 = vmatprep.subr.bf16.mxu1 %v5000_v5  ;;  %v4442_v13 = vld [vmem:[#allocation10 + $0x90] sm:$0xff]  }
 0x463   :  { %v1281_v16 = vadd.f32 %v3887_v2, %v3347_v12  ;;  %v1222_v3 = vpop.f32.mrb[23].mxu0  ;;  %3897 = vmatpush3.bf16.msra.mxu1 %v5000_v5  ;;  %v1296_v4 = vmax.f32 %v1280_v9, 0.0  ;;  %v5033_v9 = vld [vmem:[#allocation2 + $0x10] sm:$0xff]   ;;  %v5036_v2 = vld [vmem:[#allocation2 + $0x18] sm:$0xff]  }
 0x464   :  { %v1279_v19 = vadd.f32 %v3347_v12, %v1222_v3  ;;  %3898 = vmatprep.subr.bf16.mxu1 %v4998_v25  ;;  %v1294_v6 = vmax.f32 %v1278_v15, 0.0  ;;  %v4443_v15 = vld [vmem:[#allocation10 + $0x98] sm:$0xff]   ;;  %v4444_v3 = vld [vmem:[#allocation10 + $0xa0] sm:$0xff]  }
 0x465   :  { %v1297_v21 = vmax.f32 %v1281_v16, 0.0  ;;  %v5039_v16 = vld [vmem:[#allocation2 + $0x20] sm:$0xff]  }
 0x466   :  { %v1295_v23 = vmax.f32 %v1279_v19, 0.0  ;;  %v4445_v19 = vld [vmem:[#allocation10 + $0xa8] sm:$0xff]  }
 0x467   :  { %v5005_v14 = vpack.c.bf16 %v1297_v21, %v1296_v4  ;;  %3899 = vmatpush3.bf16.msra.mxu1 %v4998_v25  ;;  %v5042_v4 = vld [vmem:[#allocation2 + $0x28] sm:$0xff]   ;;  %v5045_v21 = vld [vmem:[#allocation2 + $0x30] sm:$0xff]  }
 0x468   :  { %v5008_v24 = vpack.c.bf16 %v1295_v23, %v1294_v6  ;;  %v3890_v27 = vpop.f32.mrb[24].mxu0  ;;  %v4446_v6 = vld [vmem:[#allocation10 + $0xb0] sm:$0xff]   ;;  %v4447_v23 = vld [vmem:[#allocation10 + $0xb8] sm:$0xff]  }
 0x469   :  { %v1284_v10 = vadd.f32 %v3890_v27, %v3347_v12  ;;  %v1235_v29 = vpop.f32.mrb[25].mxu0  ;;  %v4448_v27 = vld [vmem:[#allocation8 + $0x80] sm:$0xff]  }
 0x46a   :  { %v1282_v31 = vadd.f32 %v3347_v12, %v1235_v29  ;;  %v3891_v32 = vpop.f32.mrb[26].mxu0  ;;  %3900 = vmatprep.subr.bf16.mxu1 %v5008_v24 }
 0x46b   :  { %v1285_v33 = vadd.f32 %v3891_v32, %v3347_v12  ;;  %v1238_v18 = vpop.f32.mrb[27].mxu0  ;;  %3901 = vmatpush3.bf16.msra.mxu1 %v5008_v24  ;;  %v1300_v26 = vmax.f32 %v1284_v10, 0.0 }
 0x46c   :  { %v1283_v22 = vadd.f32 %v3347_v12, %v1238_v18  ;;  %3902 = vmatprep.subr.bf16.mxu1 %v5005_v14  ;;  %v1298_v37 = vmax.f32 %v1282_v31, 0.0 }
 0x46d   :  { %v1301_v30 = vmax.f32 %v1285_v33, 0.0 }
 0x46e   :  { %v1299_v39 = vmax.f32 %v1283_v22, 0.0 }
 0x46f   :  { %v5013_v35 = vpack.c.bf16 %v1301_v30, %v1300_v26  ;;  %3903 = vmatpush3.bf16.msra.mxu1 %v5005_v14 }
 0x470   :  { %v5016_v36 = vpack.c.bf16 %v1299_v39, %v1298_v37  ;;  %v3894_v40 = vpop.f32.mrb[28].mxu0  ;;  %v4449_v37 = vld [vmem:[#allocation8 + $0x88] sm:$0xff]  }
 0x471   :  { %v1288_v50 = vadd.f32 %v3894_v40, %v3347_v12  ;;  %v1251_v53 = vpop.f32.mrb[29].mxu0 }
 0x472   :  { %v1286_v56 = vadd.f32 %v3347_v12, %v1251_v53  ;;  %v3895_v57 = vpop.f32.mrb[30].mxu0  ;;  %3904 = vmatprep.subr.bf16.mxu1 %v5016_v36 }
 0x473   :  { %v1289_v7 = vadd.f32 %v3895_v57, %v3347_v12  ;;  %v1254_v58 = vpop.f32.mrb[31].mxu0  ;;  %3905 = vmatpush3.bf16.msra.mxu1 %v5016_v36  ;;  %v1304_v59 = vmax.f32 %v1288_v50, 0.0 }
 0x474   :  { %v1287_v48 = vadd.f32 %v3347_v12, %v1254_v58  ;;  %3906 = vmatprep.subr.bf16.mxu1 %v5013_v35  ;;  %v1302_v61 = vmax.f32 %v1286_v56, 0.0  ;;  %v4441_v12 = vld [vmem:[#allocation10 + $0x88] sm:$0xff]  }
 0x475   :  { %v1305_v41 = vmax.f32 %v1289_v7, 0.0  ;;  %v4450_v7 = vld [vmem:[#allocation8 + $0x90] sm:$0xff]  }
 0x476   :  { %v1303_v11 = vmax.f32 %v1287_v48, 0.0 }
 0x477   :  { %v5021_v63 = vpack.c.bf16 %v1305_v41, %v1304_v59  ;;  %3907 = vmatpush3.bf16.msra.mxu1 %v5013_v35 }
 0x478   :  { %v5024_v1 = vpack.c.bf16 %v1303_v11, %v1302_v61  ;;  %v4451_v61 = vld [vmem:[#allocation8 + $0x98] sm:$0xff]  }
 0x47a   :  { %3908 = vmatprep.subr.bf16.mxu1 %v5024_v1 }
 0x47b   :  { %3909 = vmatpush3.bf16.msra.mxu1 %v5024_v1 }
 0x47c   :  { %3910 = vmatprep.subr.bf16.mxu1 %v5021_v63 }
 0x47f   :  { %3911 = vmatpush3.bf16.msra.mxu1 %v5021_v63 }
 0x480   :  { %3928 = vmatprep.subr.bf16.mxu1 %v4440_v0 }
 0x482   :  { %3913 = vmatmul.mubr.bf16.vlgmr.msra.gmra.mrb[32].mxu1 %v5030_v8 }
 0x483   :  { %3916 = vmatprep.mubr.bf16.mxu1 %v5033_v9  ;;  %3929 = vmatpush3.bf16.msra.mxu1 %v4440_v0 }
 0x484   :  { %3930 = vmatprep.subr.bf16.mxu1 %v4441_v12 }
 0x487   :  { %3931 = vmatpush3.bf16.msra.mxu1 %v4441_v12 }
 0x488   :  { %3932 = vmatprep.subr.bf16.mxu1 %v4442_v13 }
 0x48a   :  { %3917 = vmatmul.mubr.bf16.gmra.mrb[36].mxu1 %v5036_v2 }
 0x48b   :  { %3920 = vmatprep.mubr.bf16.mxu1 %v5039_v16  ;;  %3933 = vmatpush3.bf16.msra.mxu1 %v4442_v13 }
 0x48c   :  { %3934 = vmatprep.subr.bf16.mxu1 %v4443_v15 }
 0x48f   :  { %3935 = vmatpush3.bf16.msra.mxu1 %v4443_v15 }
 0x490   :  { %3936 = vmatprep.subr.bf16.mxu1 %v4444_v3 }
 0x492   :  { %3921 = vmatmul.mubr.bf16.gmra.mrb[40].mxu1 %v5042_v4 }
 0x493   :  { %3924 = vmatprep.mubr.bf16.mxu1 %v5045_v21  ;;  %3937 = vmatpush3.bf16.msra.mxu1 %v4444_v3 }
 0x494   :  { %3938 = vmatprep.subr.bf16.mxu1 %v4445_v19 }
 0x497   :  { %3939 = vmatpush3.bf16.msra.mxu1 %v4445_v19  ;;  %v4452_v19 = vld [vmem:[#allocation8 + $0xa0] sm:$0xff]  }
 0x498   :  { %3940 = vmatprep.subr.bf16.mxu1 %v4446_v6 }
 0x49a   :  { %3925 = vmatmul.mubr.bf16.gmra.mrb[44].mxu1 %v4872_v38 }
 0x49b   :  { %3941 = vmatpush3.bf16.msra.mxu1 %v4446_v6 }
 0x49c   :  { %3942 = vmatprep.subr.bf16.mxu1 %v4447_v23 }
 0x49f   :  { %3943 = vmatpush3.bf16.msra.mxu1 %v4447_v23 }
 0x4a0   :  { %3960 = vmatprep.subr.bf16.mxu1 %v4448_v27 }
 0x555   :  { %v3914_v10 = vpop.f32.mrb[32].mxu1 }
 0x556   :  { %v1348_v29 = vpop.f32.mrb[33].mxu1  ;;  %v1413_v32 = vmul.f32 %v3914_v10, %v4877_v43 }
 0x557   :  { %v3915_v31 = vpop.f32.mrb[34].mxu1  ;;  %v1411_v22 = vmul.f32 %v1348_v29, %v4875_v42  ;;  %v4453_v29 = vld [vmem:[#allocation8 + $0xa8] sm:$0xff]  }
 0x558   :  { %v1414_v33 = vmul.f32 %v3915_v31, %v4881_v45  ;;  %v1351_v18 = vpop.f32.mrb[35].mxu1 }
 0x559   :  { %v1412_v38 = vmul.f32 %v1351_v18, %v4879_v44 }
 0x55a   :  { %v1428_v26 = vpack.c.bf16 %v1414_v33, %v1413_v32 }
 0x55b   :  { %v1427_v30 = vpack.c.bf16 %v1412_v38, %v1411_v22 }
 0x55d   :  { %v3918_v39 = vpop.f32.mrb[36].mxu1  ;;  %3944 = vmatprep.mubr.bf16.mxu1 %v1427_v30 }
 0x55e   :  { %v1364_v40 = vpop.f32.mrb[37].mxu1  ;;  %3945 = vmatmul.mubr.bf16.vlgmr.msra.gmra.mrb[48].mxu1 %v1428_v26  ;;  %v1417_v53 = vmul.f32 %v3918_v39, %v4887_v49  ;;  %v4454_v26 = vld [vmem:[#allocation8 + $0xb0] sm:$0xff]  }
 0x55f   :  { %v3919_v50 = vpop.f32.mrb[38].mxu1  ;;  %3961 = vmatpush3.bf16.msra.mxu1 %v4448_v27  ;;  %v1415_v58 = vmul.f32 %v1364_v40, %v4883_v46 }
 0x560   :  { %v1418_v56 = vmul.f32 %v3919_v50, %v4889_v51  ;;  %v1367_v57 = vpop.f32.mrb[39].mxu1  ;;  %3962 = vmatprep.subr.bf16.mxu1 %v4449_v37  ;;  %v4455_v50 = vld [vmem:[#allocation8 + $0xb8] sm:$0xff]  }
 0x561   :  { %v1416_v48 = vmul.f32 %v1367_v57, %v4885_v47 }
 0x562   :  { %v1430_v59 = vpack.c.bf16 %v1418_v56, %v1417_v53  ;;  %v3364_v53 = vld [vmem:[#allocation11 + $0x2] ss:$0 sm:$0xff] }
 0x563   :  { %v1429_v41 = vpack.c.bf16 %v1416_v48, %v1415_v58  ;;  %3963 = vmatpush3.bf16.msra.mxu1 %v4449_v37 }
 0x564   :  { %3964 = vmatprep.subr.bf16.mxu1 %v4450_v7 }
 0x565   :  { %v3922_v11 = vpop.f32.mrb[40].mxu1  ;;  %3948 = vmatprep.mubr.bf16.mxu1 %v1429_v41 }
 0x566   :  { %v1380_v0 = vpop.f32.mrb[41].mxu1  ;;  %3949 = vmatmul.mubr.bf16.gmra.mrb[52].mxu1 %v1430_v59  ;;  %v1421_v13 = vmul.f32 %v3922_v11, %v4903_v17 }
 0x567   :  { %v3923_v12 = vpop.f32.mrb[42].mxu1  ;;  %3965 = vmatpush3.bf16.msra.mxu1 %v4450_v7  ;;  %v1419_v6 = vmul.f32 %v1380_v0, %v4895_v60 }
 0x568   :  { %v1422_v15 = vmul.f32 %v3923_v12, %v4905_v20  ;;  %v1383_v3 = vpop.f32.mrb[43].mxu1  ;;  %3966 = vmatprep.subr.bf16.mxu1 %v4451_v61 }
 0x569   :  { %v1420_v23 = vmul.f32 %v1383_v3, %v4897_v62 }
 0x56a   :  { %v1432_v27 = vpack.c.bf16 %v1422_v15, %v1421_v13 }
 0x56b   :  { %v1431_v10 = vpack.c.bf16 %v1420_v23, %v1419_v6  ;;  %3967 = vmatpush3.bf16.msra.mxu1 %v4451_v61 }
 0x56c   :  { %3968 = vmatprep.subr.bf16.mxu1 %v4452_v19 }
 0x56d   :  { %v3926_v31 = vpop.f32.mrb[44].mxu1  ;;  %3952 = vmatprep.mubr.bf16.mxu1 %v1431_v10 }
 0x56e   :  { %v1396_v32 = vpop.f32.mrb[45].mxu1  ;;  %3953 = vmatmul.mubr.bf16.gmra.mrb[56].mxu1 %v1432_v27  ;;  %v1425_v18 = vmul.f32 %v3926_v31, %v4915_v52 }
 0x56f   :  { %v3927_v33 = vpop.f32.mrb[46].mxu1  ;;  %3969 = vmatpush3.bf16.msra.mxu1 %v4452_v19  ;;  %v1423_v30 = vmul.f32 %v1396_v32, %v4907_v28 }
 0x570   :  { %v1426_v22 = vmul.f32 %v3927_v33, %v4917_v54  ;;  %v1399_v38 = vpop.f32.mrb[47].mxu1  ;;  %3970 = vmatprep.subr.bf16.mxu1 %v4453_v29 }
 0x571   :  { %v1424_v37 = vmul.f32 %v1399_v38, %v4911_v34 }
 0x572   :  { %v1434_v39 = vpack.c.bf16 %v1426_v22, %v1425_v18 }
 0x573   :  { %v1433_v40 = vpack.c.bf16 %v1424_v37, %v1423_v30  ;;  %3971 = vmatpush3.bf16.msra.mxu1 %v4453_v29 }
 0x574   :  { %3972 = vmatprep.subr.bf16.mxu1 %v4454_v26 }
 0x575   :  { %3956 = vmatprep.mubr.bf16.mxu1 %v1433_v40 }
 0x576   :  { %3957 = vmatmul.mubr.bf16.gmra.mrb[60].mxu1 %v1434_v39 }
 0x577   :  { %3973 = vmatpush3.bf16.msra.mxu1 %v4454_v26  ;;  %3976 = vmatprep.mubr.bf16.mxu1 %v5000_v5 }
 0x578   :  { %3974 = vmatprep.subr.bf16.mxu1 %v4455_v50 }
 0x57b   :  { %3975 = vmatpush3.bf16.msra.mxu1 %v4455_v50 }
 0x57e   :  { %3977 = vmatmul.mubr.bf16.vlgmr.msra.gmra.mrb[48].mxu1 %v4998_v25 }
 0x57f   :  { %3980 = vmatprep.mubr.bf16.mxu1 %v5008_v24 }
 0x586   :  { %3981 = vmatmul.mubr.bf16.gmra.mrb[52].mxu1 %v5005_v14 }
 0x587   :  { %3984 = vmatprep.mubr.bf16.mxu1 %v5016_v36 }
 0x58e   :  { %3985 = vmatmul.mubr.bf16.gmra.mrb[56].mxu1 %v5013_v35 }
 0x58f   :  { %3988 = vmatprep.mubr.bf16.mxu1 %v5024_v1 }
 0x596   :  { %3989 = vmatmul.mubr.bf16.gmra.mrb[60].mxu1 %v5021_v63 }
 0x597   :  { %4104 = vmatprep.mubr.bf16.mxu1 %v4995_v55 }
 0x651   :  { %v3978_v5 = vpop.f32.mrb[48].mxu1 }
 0x652   :  { %v1769_v56 = vadd.f32 %v3978_v5, %v3364_v53  ;;  %v1696_v57 = vpop.f32.mrb[49].mxu1 }
 0x653   :  { %v1767_v7 = vadd.f32 %v3364_v53, %v1696_v57  ;;  %v3979_v25 = vpop.f32.mrb[50].mxu1 }
 0x654   :  { %v1770_v58 = vadd.f32 %v3979_v25, %v3364_v53  ;;  %v1699_v24 = vpop.f32.mrb[51].mxu1  ;;  %v1785_v14 = vmax.f32 %v1769_v56, 0.0 }
 0x655   :  { %v1768_v48 = vadd.f32 %v3364_v53, %v1699_v24  ;;  %v1783_v36 = vmax.f32 %v1767_v7, 0.0 }
 0x656   :  { %v1786_v59 = vmax.f32 %v1770_v58, 0.0 }
 0x657   :  { %v1784_v41 = vmax.f32 %v1768_v48, 0.0 }
 0x658   :  { %v5074_v35 = vpack.c.bf16 %v1786_v59, %v1785_v14 }
 0x659   :  { %v5076_v1 = vpack.c.bf16 %v1784_v41, %v1783_v36  ;;  %v3982_v63 = vpop.f32.mrb[52].mxu1 }
 0x65a   :  { %v1773_v61 = vadd.f32 %v3982_v63, %v3364_v53  ;;  %v1712_v11 = vpop.f32.mrb[53].mxu1 }
 0x65b   :  { %v1771_v0 = vadd.f32 %v3364_v53, %v1712_v11  ;;  %v3983_v12 = vpop.f32.mrb[54].mxu1  ;;  %3992 = vmatprep.subr.bf16.mxu0 %v5076_v1 }
 0x65c   :  { %v1774_v13 = vadd.f32 %v3983_v12, %v3364_v53  ;;  %v1715_v15 = vpop.f32.mrb[55].mxu1  ;;  %3993 = vmatpush3.bf16.msra.mxu0 %v5076_v1  ;;  %v1789_v19 = vmax.f32 %v1773_v61, 0.0  ;;  %v4456_v12 = vld [vmem:[#allocation10 + $0xc0] sm:$0xff]  }
 0x65d   :  { %v1772_v3 = vadd.f32 %v3364_v53, %v1715_v15  ;;  %3994 = vmatprep.subr.bf16.mxu0 %v5074_v35  ;;  %v1787_v23 = vmax.f32 %v1771_v0, 0.0  ;;  %v4459_v15 = vld [vmem:[#allocation10 + $0xd8] sm:$0xff]  }
 0x65e   :  { %v1790_v6 = vmax.f32 %v1774_v13, 0.0  ;;  %v4458_v13 = vld [vmem:[#allocation10 + $0xd0] sm:$0xff]  }
 0x65f   :  { %v1788_v27 = vmax.f32 %v1772_v3, 0.0  ;;  %v4460_v3 = vld [vmem:[#allocation10 + $0xe0] sm:$0xff]  }
 0x660   :  { %v5081_v10 = vpack.c.bf16 %v1790_v6, %v1789_v19  ;;  %3995 = vmatpush3.bf16.msra.mxu0 %v5074_v35  ;;  %v4461_v19 = vld [vmem:[#allocation10 + $0xe8] sm:$0xff]   ;;  %v5112_v6 = vld [vmem:[#allocation2 + $0x38] sm:$0xff]  }
 0x661   :  { %v5084_v29 = vpack.c.bf16 %v1788_v27, %v1787_v23  ;;  %v3986_v31 = vpop.f32.mrb[56].mxu1  ;;  %v4462_v23 = vld [vmem:[#allocation10 + $0xf0] sm:$0xff]   ;;  %v4463_v27 = vld [vmem:[#allocation10 + $0xf8] sm:$0xff]  }
 0x662   :  { %v1777_v32 = vadd.f32 %v3986_v31, %v3364_v53  ;;  %v1728_v33 = vpop.f32.mrb[57].mxu1  ;;  %v4464_v31 = vld [vmem:[#allocation8 + $0xc0] sm:$0xff]  }
 0x663   :  { %v1775_v18 = vadd.f32 %v3364_v53, %v1728_v33  ;;  %v3987_v22 = vpop.f32.mrb[58].mxu1  ;;  %3996 = vmatprep.subr.bf16.mxu0 %v5084_v29 }
 0x664   :  { %v1778_v38 = vadd.f32 %v3987_v22, %v3364_v53  ;;  %v1731_v26 = vpop.f32.mrb[59].mxu1  ;;  %3997 = vmatpush3.bf16.msra.mxu0 %v5084_v29  ;;  %v1793_v37 = vmax.f32 %v1777_v32, 0.0 }
 0x665   :  { %v1776_v30 = vadd.f32 %v3364_v53, %v1731_v26  ;;  %3998 = vmatprep.subr.bf16.mxu0 %v5081_v10  ;;  %v1791_v40 = vmax.f32 %v1775_v18, 0.0 }
 0x666   :  { %v1794_v39 = vmax.f32 %v1778_v38, 0.0 }
 0x667   :  { %v1792_v50 = vmax.f32 %v1776_v30, 0.0 }
 0x668   :  { %v5089_v5 = vpack.c.bf16 %v1794_v39, %v1793_v37  ;;  %3999 = vmatpush3.bf16.msra.mxu0 %v5081_v10 }
 0x669   :  { %v5092_v56 = vpack.c.bf16 %v1792_v50, %v1791_v40  ;;  %v3990_v57 = vpop.f32.mrb[60].mxu1  ;;  %v4465_v50 = vld [vmem:[#allocation8 + $0xc8] sm:$0xff]  }
 0x66a   :  { %v1781_v7 = vadd.f32 %v3990_v57, %v3364_v53  ;;  %v1744_v25 = vpop.f32.mrb[61].mxu1 }
 0x66b   :  { %v1779_v58 = vadd.f32 %v3364_v53, %v1744_v25  ;;  %v3991_v24 = vpop.f32.mrb[62].mxu1  ;;  %4000 = vmatprep.subr.bf16.mxu0 %v5092_v56 }
 0x66c   :  { %v1782_v48 = vadd.f32 %v3991_v24, %v3364_v53  ;;  %v1747_v14 = vpop.f32.mrb[63].mxu1  ;;  %4001 = vmatpush3.bf16.msra.mxu0 %v5092_v56  ;;  %v1797_v36 = vmax.f32 %v1781_v7, 0.0 }
 0x66d   :  { %v1780_v59 = vadd.f32 %v3364_v53, %v1747_v14  ;;  %4002 = vmatprep.subr.bf16.mxu0 %v5089_v5  ;;  %v1795_v63 = vmax.f32 %v1779_v58, 0.0  ;;  %v4457_v53 = vld [vmem:[#allocation10 + $0xc8] sm:$0xff]   ;;  %v4466_v14 = vld [vmem:[#allocation8 + $0xd0] sm:$0xff]  }
 0x66e   :  { %v1798_v41 = vmax.f32 %v1782_v48, 0.0 }
 0x66f   :  { %v1796_v61 = vmax.f32 %v1780_v59, 0.0 }
 0x670   :  { %v5097_v11 = vpack.c.bf16 %v1798_v41, %v1797_v36  ;;  %4003 = vmatpush3.bf16.msra.mxu0 %v5089_v5 }
 0x671   :  { %v5100_v0 = vpack.c.bf16 %v1796_v61, %v1795_v63  ;;  %v4467_v61 = vld [vmem:[#allocation8 + $0xd8] sm:$0xff]  }
 0x673   :  { %4004 = vmatprep.subr.bf16.mxu0 %v5100_v0 }
 0x674   :  { %4005 = vmatpush3.bf16.msra.mxu0 %v5100_v0 }
 0x675   :  { %4006 = vmatprep.subr.bf16.mxu0 %v5097_v11 }
 0x678   :  { %4007 = vmatpush3.bf16.msra.mxu0 %v5097_v11 }
 0x679   :  { %4024 = vmatprep.subr.bf16.mxu0 %v4456_v12 }
 0x67b   :  { %4009 = vmatmul.mubr.bf16.vlgmr.msra.gmra.mrb[32].mxu0 %v5030_v8 }
 0x67c   :  { %4012 = vmatprep.mubr.bf16.mxu0 %v5033_v9  ;;  %4025 = vmatpush3.bf16.msra.mxu0 %v4456_v12 }
 0x67d   :  { %4026 = vmatprep.subr.bf16.mxu0 %v4457_v53 }
 0x680   :  { %4027 = vmatpush3.bf16.msra.mxu0 %v4457_v53 }
 0x681   :  { %4028 = vmatprep.subr.bf16.mxu0 %v4458_v13 }
 0x683   :  { %4013 = vmatmul.mubr.bf16.gmra.mrb[36].mxu0 %v5036_v2 }
 0x684   :  { %4016 = vmatprep.mubr.bf16.mxu0 %v5039_v16  ;;  %4029 = vmatpush3.bf16.msra.mxu0 %v4458_v13 }
 0x685   :  { %4030 = vmatprep.subr.bf16.mxu0 %v4459_v15 }
 0x688   :  { %4031 = vmatpush3.bf16.msra.mxu0 %v4459_v15 }
 0x689   :  { %4032 = vmatprep.subr.bf16.mxu0 %v4460_v3 }
 0x68b   :  { %4017 = vmatmul.mubr.bf16.gmra.mrb[40].mxu0 %v5042_v4 }
 0x68c   :  { %4020 = vmatprep.mubr.bf16.mxu0 %v5045_v21  ;;  %4033 = vmatpush3.bf16.msra.mxu0 %v4460_v3 }
 0x68d   :  { %4034 = vmatprep.subr.bf16.mxu0 %v4461_v19 }
 0x690   :  { %4035 = vmatpush3.bf16.msra.mxu0 %v4461_v19 }
 0x691   :  { %4036 = vmatprep.subr.bf16.mxu0 %v4462_v23 }
 0x693   :  { %4021 = vmatmul.mubr.bf16.gmra.mrb[44].mxu0 %v5112_v6 }
 0x694   :  { %4037 = vmatpush3.bf16.msra.mxu0 %v4462_v23  ;;  %v4468_v23 = vld [vmem:[#allocation8 + $0xe0] sm:$0xff]  }
 0x695   :  { %4038 = vmatprep.subr.bf16.mxu0 %v4463_v27 }
 0x698   :  { %4039 = vmatpush3.bf16.msra.mxu0 %v4463_v27 }
 0x699   :  { %4056 = vmatprep.subr.bf16.mxu0 %v4464_v31 }
 0x74e   :  { %v4010_v32 = vpop.f32.mrb[32].mxu0 }
 0x74f   :  { %v1841_v33 = vpop.f32.mrb[33].mxu0  ;;  %v1906_v22 = vmul.f32 %v4010_v32, %v4877_v43 }
 0x750   :  { %v4011_v18 = vpop.f32.mrb[34].mxu0  ;;  %v1904_v30 = vmul.f32 %v1841_v33, %v4875_v42 }
 0x751   :  { %v1907_v38 = vmul.f32 %v4011_v18, %v4881_v45  ;;  %v1844_v26 = vpop.f32.mrb[35].mxu0  ;;  %v4469_v18 = vld [vmem:[#allocation8 + $0xe8] sm:$0xff]  }
 0x752   :  { %v1905_v37 = vmul.f32 %v1844_v26, %v4879_v44 }
 0x753   :  { %v1921_v39 = vpack.c.bf16 %v1907_v38, %v1906_v22 }
 0x754   :  { %v1920_v40 = vpack.c.bf16 %v1905_v37, %v1904_v30 }
 0x756   :  { %v4014_v57 = vpop.f32.mrb[36].mxu0  ;;  %4040 = vmatprep.mubr.bf16.mxu0 %v1920_v40  ;;  %v4470_v40 = vld [vmem:[#allocation8 + $0xf0] sm:$0xff]  }
 0x757   :  { %v1857_v7 = vpop.f32.mrb[37].mxu0  ;;  %4041 = vmatmul.mubr.bf16.vlgmr.msra.gmra.mrb[48].mxu0 %v1921_v39  ;;  %v1910_v58 = vmul.f32 %v4014_v57, %v4887_v49 }
 0x758   :  { %v4015_v25 = vpop.f32.mrb[38].mxu0  ;;  %4057 = vmatpush3.bf16.msra.mxu0 %v4464_v31  ;;  %v1908_v59 = vmul.f32 %v1857_v7, %v4883_v46 }
 0x759   :  { %v1911_v24 = vmul.f32 %v4015_v25, %v4889_v51  ;;  %v1860_v48 = vpop.f32.mrb[39].mxu0  ;;  %4058 = vmatprep.subr.bf16.mxu0 %v4465_v50 }
 0x75a   :  { %v1909_v36 = vmul.f32 %v1860_v48, %v4885_v47 }
 0x75b   :  { %v1923_v41 = vpack.c.bf16 %v1911_v24, %v1910_v58  ;;  %v4471_v58 = vld [vmem:[#allocation8 + $0xf8] sm:$0xff]   ;;  %v3381_v24 = vld [vmem:[#allocation11 + $0x3] ss:$0 sm:$0xff] }
 0x75c   :  { %v1922_v63 = vpack.c.bf16 %v1909_v36, %v1908_v59  ;;  %4059 = vmatpush3.bf16.msra.mxu0 %v4465_v50 }
 0x75d   :  { %4060 = vmatprep.subr.bf16.mxu0 %v4466_v14 }
 0x75e   :  { %v4018_v12 = vpop.f32.mrb[40].mxu0  ;;  %4044 = vmatprep.mubr.bf16.mxu0 %v1922_v63 }
 0x75f   :  { %v1873_v53 = vpop.f32.mrb[41].mxu0  ;;  %4045 = vmatmul.mubr.bf16.gmra.mrb[52].mxu0 %v1923_v41  ;;  %v1914_v15 = vmul.f32 %v4018_v12, %v4903_v17 }
 0x760   :  { %v4019_v13 = vpop.f32.mrb[42].mxu0  ;;  %4061 = vmatpush3.bf16.msra.mxu0 %v4466_v14  ;;  %v1912_v27 = vmul.f32 %v1873_v53, %v4895_v60 }
 0x761   :  { %v1915_v3 = vmul.f32 %v4019_v13, %v4905_v20  ;;  %v1876_v19 = vpop.f32.mrb[43].mxu0  ;;  %4062 = vmatprep.subr.bf16.mxu0 %v4467_v61 }
 0x762   :  { %v1913_v31 = vmul.f32 %v1876_v19, %v4897_v62 }
 0x763   :  { %v1925_v32 = vpack.c.bf16 %v1915_v3, %v1914_v15 }
 0x764   :  { %v1924_v33 = vpack.c.bf16 %v1913_v31, %v1912_v27  ;;  %4063 = vmatpush3.bf16.msra.mxu0 %v4467_v61 }
 0x765   :  { %4064 = vmatprep.subr.bf16.mxu0 %v4468_v23 }
 0x766   :  { %v4022_v22 = vpop.f32.mrb[44].mxu0  ;;  %4048 = vmatprep.mubr.bf16.mxu0 %v1924_v33 }
 0x767   :  { %v1889_v38 = vpop.f32.mrb[45].mxu0  ;;  %4049 = vmatmul.mubr.bf16.gmra.mrb[56].mxu0 %v1925_v32  ;;  %v1918_v30 = vmul.f32 %v4022_v22, %v4915_v52 }
 0x768   :  { %v4023_v26 = vpop.f32.mrb[46].mxu0  ;;  %4065 = vmatpush3.bf16.msra.mxu0 %v4468_v23  ;;  %v1916_v50 = vmul.f32 %v1889_v38, %v4907_v28 }
 0x769   :  { %v1919_v37 = vmul.f32 %v4023_v26, %v4917_v54  ;;  %v1892_v39 = vpop.f32.mrb[47].mxu0  ;;  %4066 = vmatprep.subr.bf16.mxu0 %v4469_v18 }
 0x76a   :  { %v1917_v57 = vmul.f32 %v1892_v39, %v4911_v34 }
 0x76b   :  { %v1927_v7 = vpack.c.bf16 %v1919_v37, %v1918_v30 }
 0x76c   :  { %v1926_v25 = vpack.c.bf16 %v1917_v57, %v1916_v50  ;;  %4067 = vmatpush3.bf16.msra.mxu0 %v4469_v18 }
 0x76d   :  { %4068 = vmatprep.subr.bf16.mxu0 %v4470_v40 }
 0x76e   :  { %4052 = vmatprep.mubr.bf16.mxu0 %v1926_v25 }
 0x76f   :  { %4053 = vmatmul.mubr.bf16.gmra.mrb[60].mxu0 %v1927_v7 }
 0x770   :  { %4069 = vmatpush3.bf16.msra.mxu0 %v4470_v40  ;;  %4072 = vmatprep.mubr.bf16.mxu0 %v5076_v1 }
 0x771   :  { %4070 = vmatprep.subr.bf16.mxu0 %v4471_v58 }
 0x774   :  { %4071 = vmatpush3.bf16.msra.mxu0 %v4471_v58 }
 0x777   :  { %4073 = vmatmul.mubr.bf16.vlgmr.msra.gmra.mrb[48].mxu0 %v5074_v35 }
 0x778   :  { %4076 = vmatprep.mubr.bf16.mxu0 %v5084_v29 }
 0x77f   :  { %4077 = vmatmul.mubr.bf16.gmra.mrb[52].mxu0 %v5081_v10 }
 0x780   :  { %4080 = vmatprep.mubr.bf16.mxu0 %v5092_v56 }
 0x787   :  { %4081 = vmatmul.mubr.bf16.gmra.mrb[56].mxu0 %v5089_v5 }
 0x788   :  { %4084 = vmatprep.mubr.bf16.mxu0 %v5100_v0 }
 0x78f   :  { %4085 = vmatmul.mubr.bf16.gmra.mrb[60].mxu0 %v5097_v11 }
 0x790   :  { %4200 = vmatprep.mubr.bf16.mxu0 %v4995_v55 }
 0x84a   :  { %v4074_v1 = vpop.f32.mrb[48].mxu0 }
 0x84b   :  { %v2262_v48 = vadd.f32 %v4074_v1, %v3381_v24  ;;  %v2189_v14 = vpop.f32.mrb[49].mxu0 }
 0x84c   :  { %v2260_v59 = vadd.f32 %v3381_v24, %v2189_v14  ;;  %v4075_v35 = vpop.f32.mrb[50].mxu0 }
 0x84d   :  { %v2263_v36 = vadd.f32 %v4075_v35, %v3381_v24  ;;  %v2192_v29 = vpop.f32.mrb[51].mxu0  ;;  %v2278_v10 = vmax.f32 %v2262_v48, 0.0 }
 0x84e   :  { %v2261_v41 = vadd.f32 %v3381_v24, %v2192_v29  ;;  %v2276_v56 = vmax.f32 %v2260_v59, 0.0 }
 0x84f   :  { %v2279_v63 = vmax.f32 %v2263_v36, 0.0 }
 0x850   :  { %v2277_v61 = vmax.f32 %v2261_v41, 0.0 }
 0x851   :  { %v5140_v5 = vpack.c.bf16 %v2279_v63, %v2278_v10 }
 0x852   :  { %v5142_v0 = vpack.c.bf16 %v2277_v61, %v2276_v56  ;;  %v4078_v11 = vpop.f32.mrb[52].mxu0 }
 0x853   :  { %v2266_v12 = vadd.f32 %v4078_v11, %v3381_v24  ;;  %v2205_v55 = vpop.f32.mrb[53].mxu0 }
 0x854   :  { %v2264_v53 = vadd.f32 %v3381_v24, %v2205_v55  ;;  %v4079_v13 = vpop.f32.mrb[54].mxu0  ;;  %4088 = vmatprep.subr.bf16.mxu1 %v5142_v0 }
 0x855   :  { %v2267_v15 = vadd.f32 %v4079_v13, %v3381_v24  ;;  %v2208_v3 = vpop.f32.mrb[55].mxu0  ;;  %4089 = vmatpush3.bf16.msra.mxu1 %v5142_v0  ;;  %v2282_v23 = vmax.f32 %v2266_v12, 0.0  ;;  %v4472_v13 = vld [vmem:[#allocation10 + $0x100] sm:$0xff]  }
 0x856   :  { %v2265_v19 = vadd.f32 %v3381_v24, %v2208_v3  ;;  %4090 = vmatprep.subr.bf16.mxu1 %v5140_v5  ;;  %v2280_v31 = vmax.f32 %v2264_v53, 0.0  ;;  %v4475_v3 = vld [vmem:[#allocation10 + $0x118] sm:$0xff]  }
 0x857   :  { %v2283_v27 = vmax.f32 %v2267_v15, 0.0  ;;  %v4474_v15 = vld [vmem:[#allocation10 + $0x110] sm:$0xff]  }
 0x858   :  { %v2281_v32 = vmax.f32 %v2265_v19, 0.0  ;;  %v4476_v19 = vld [vmem:[#allocation10 + $0x120] sm:$0xff]  }
 0x859   :  { %v5147_v33 = vpack.c.bf16 %v2283_v27, %v2282_v23  ;;  %4091 = vmatpush3.bf16.msra.mxu1 %v5140_v5  ;;  %v4477_v23 = vld [vmem:[#allocation10 + $0x128] sm:$0xff]  }
 0x85a   :  { %v5150_v18 = vpack.c.bf16 %v2281_v32, %v2280_v31  ;;  %v4082_v22 = vpop.f32.mrb[56].mxu0 }
 0x85b   :  { %v2270_v38 = vadd.f32 %v4082_v22, %v3381_v24  ;;  %v2221_v26 = vpop.f32.mrb[57].mxu0 }
 0x85c   :  { %v2268_v30 = vadd.f32 %v3381_v24, %v2221_v26  ;;  %v4083_v37 = vpop.f32.mrb[58].mxu0  ;;  %4092 = vmatprep.subr.bf16.mxu1 %v5150_v18 }
 0x85d   :  { %v2271_v39 = vadd.f32 %v4083_v37, %v3381_v24  ;;  %v2224_v40 = vpop.f32.mrb[59].mxu0  ;;  %4093 = vmatpush3.bf16.msra.mxu1 %v5150_v18  ;;  %v2286_v57 = vmax.f32 %v2270_v38, 0.0  ;;  %v4481_v37 = vld [vmem:[#allocation8 + $0x108] sm:$0xff]  }
 0x85e   :  { %v2269_v50 = vadd.f32 %v3381_v24, %v2224_v40  ;;  %4094 = vmatprep.subr.bf16.mxu1 %v5147_v33  ;;  %v2284_v25 = vmax.f32 %v2268_v30, 0.0 }
 0x85f   :  { %v2287_v7 = vmax.f32 %v2271_v39, 0.0 }
 0x860   :  { %v2285_v58 = vmax.f32 %v2269_v50, 0.0 }
 0x861   :  { %v5155_v1 = vpack.c.bf16 %v2287_v7, %v2286_v57  ;;  %4095 = vmatpush3.bf16.msra.mxu1 %v5147_v33 }
 0x862   :  { %v5158_v48 = vpack.c.bf16 %v2285_v58, %v2284_v25  ;;  %v4086_v14 = vpop.f32.mrb[60].mxu0  ;;  %v4482_v58 = vld [vmem:[#allocation8 + $0x110] sm:$0xff]  }
 0x863   :  { %v2274_v59 = vadd.f32 %v4086_v14, %v3381_v24  ;;  %v2237_v35 = vpop.f32.mrb[61].mxu0 }
 0x864   :  { %v2272_v36 = vadd.f32 %v3381_v24, %v2237_v35  ;;  %v4087_v29 = vpop.f32.mrb[62].mxu0  ;;  %4096 = vmatprep.subr.bf16.mxu1 %v5158_v48 }
 0x865   :  { %v2275_v41 = vadd.f32 %v4087_v29, %v3381_v24  ;;  %v2240_v10 = vpop.f32.mrb[63].mxu0  ;;  %4097 = vmatpush3.bf16.msra.mxu1 %v5158_v48  ;;  %v2290_v56 = vmax.f32 %v2274_v59, 0.0  ;;  %v4483_v29 = vld [vmem:[#allocation8 + $0x118] sm:$0xff]  }
 0x866   :  { %v2273_v63 = vadd.f32 %v3381_v24, %v2240_v10  ;;  %4098 = vmatprep.subr.bf16.mxu1 %v5155_v1  ;;  %v2288_v11 = vmax.f32 %v2272_v36, 0.0  ;;  %v4473_v24 = vld [vmem:[#allocation10 + $0x108] sm:$0xff]  }
 0x867   :  { %v2291_v61 = vmax.f32 %v2275_v41, 0.0 }
 0x868   :  { %v2289_v12 = vmax.f32 %v2273_v63, 0.0 }
 0x869   :  { %v5163_v55 = vpack.c.bf16 %v2291_v61, %v2290_v56  ;;  %4099 = vmatpush3.bf16.msra.mxu1 %v5155_v1 }
 0x86a   :  { %v5166_v53 = vpack.c.bf16 %v2289_v12, %v2288_v11  ;;  %v4484_v12 = vld [vmem:[#allocation8 + $0x120] sm:$0xff]  }
 0x86c   :  { %4100 = vmatprep.subr.bf16.mxu1 %v5166_v53 }
 0x86d   :  { %4101 = vmatpush3.bf16.msra.mxu1 %v5166_v53 }
 0x86e   :  { %4102 = vmatprep.subr.bf16.mxu1 %v5163_v55 }
 0x871   :  { %4103 = vmatpush3.bf16.msra.mxu1 %v5163_v55 }
 0x872   :  { %4120 = vmatprep.subr.bf16.mxu1 %v4472_v13 }
 0x874   :  { %4105 = vmatmul.mubr.bf16.vlgmr.msra.gmra.mrb[64].mxu1 %v5030_v8  ;;  %v4478_v8 = vld [vmem:[#allocation10 + $0x130] sm:$0xff]  }
 0x875   :  { %4108 = vmatprep.mubr.bf16.mxu1 %v5033_v9  ;;  %4121 = vmatpush3.bf16.msra.mxu1 %v4472_v13  ;;  %v4479_v9 = vld [vmem:[#allocation10 + $0x138] sm:$0xff]  }
 0x876   :  { %4122 = vmatprep.subr.bf16.mxu1 %v4473_v24 }
 0x879   :  { %4123 = vmatpush3.bf16.msra.mxu1 %v4473_v24 }
 0x87a   :  { %4124 = vmatprep.subr.bf16.mxu1 %v4474_v15 }
 0x87c   :  { %4109 = vmatmul.mubr.bf16.gmra.mrb[68].mxu1 %v5036_v2  ;;  %v4480_v2 = vld [vmem:[#allocation8 + $0x100] sm:$0xff]  }
 0x87d   :  { %4112 = vmatprep.mubr.bf16.mxu1 %v5039_v16  ;;  %4125 = vmatpush3.bf16.msra.mxu1 %v4474_v15 }
 0x87e   :  { %4126 = vmatprep.subr.bf16.mxu1 %v4475_v3 }
 0x881   :  { %4127 = vmatpush3.bf16.msra.mxu1 %v4475_v3 }
 0x882   :  { %4128 = vmatprep.subr.bf16.mxu1 %v4476_v19 }
 0x884   :  { %4113 = vmatmul.mubr.bf16.gmra.mrb[72].mxu1 %v5042_v4 }
 0x885   :  { %4116 = vmatprep.mubr.bf16.mxu1 %v5045_v21  ;;  %4129 = vmatpush3.bf16.msra.mxu1 %v4476_v19  ;;  %v4485_v19 = vld [vmem:[#allocation8 + $0x128] sm:$0xff]  }
 0x886   :  { %4130 = vmatprep.subr.bf16.mxu1 %v4477_v23 }
 0x889   :  { %4131 = vmatpush3.bf16.msra.mxu1 %v4477_v23 }
 0x88a   :  { %4132 = vmatprep.subr.bf16.mxu1 %v4478_v8 }
 0x88c   :  { %4117 = vmatmul.mubr.bf16.gmra.mrb[76].mxu1 %v5112_v6 }
 0x88d   :  { %4133 = vmatpush3.bf16.msra.mxu1 %v4478_v8 }
 0x88e   :  { %4134 = vmatprep.subr.bf16.mxu1 %v4479_v9 }
 0x891   :  { %4135 = vmatpush3.bf16.msra.mxu1 %v4479_v9 }
 0x892   :  { %4152 = vmatprep.subr.bf16.mxu1 %v4480_v2 }
 0x947   :  { %v4106_v16 = vpop.f32.mrb[64].mxu1 }
 0x948   :  { %v2334_v27 = vpop.f32.mrb[65].mxu1  ;;  %v2399_v4 = vmul.f32 %v4106_v16, %v4877_v43 }
 0x949   :  { %v4107_v31 = vpop.f32.mrb[66].mxu1  ;;  %v2397_v22 = vmul.f32 %v2334_v27, %v4875_v42 }
 0x94a   :  { %v2400_v21 = vmul.f32 %v4107_v31, %v4881_v45  ;;  %v2337_v32 = vpop.f32.mrb[67].mxu1  ;;  %v4486_v31 = vld [vmem:[#allocation8 + $0x130] sm:$0xff]  }
 0x94b   :  { %v2398_v38 = vmul.f32 %v2337_v32, %v4879_v44 }
 0x94c   :  { %v2414_v26 = vpack.c.bf16 %v2400_v21, %v2399_v4 }
 0x94d   :  { %v2413_v30 = vpack.c.bf16 %v2398_v38, %v2397_v22  ;;  %v4487_v38 = vld [vmem:[#allocation8 + $0x138] sm:$0xff]  }
 0x94f   :  { %v4110_v39 = vpop.f32.mrb[68].mxu1  ;;  %4136 = vmatprep.mubr.bf16.mxu1 %v2413_v30 }
 0x950   :  { %v2350_v40 = vpop.f32.mrb[69].mxu1  ;;  %4137 = vmatmul.mubr.bf16.vlgmr.msra.gmra.mrb[80].mxu1 %v2414_v26  ;;  %v2403_v57 = vmul.f32 %v4110_v39, %v4887_v49  ;;  %v3398_v26 = vld [vmem:[#allocation11 + $0x4] ss:$0 sm:$0xff] }
 0x951   :  { %v4111_v50 = vpop.f32.mrb[70].mxu1  ;;  %4153 = vmatpush3.bf16.msra.mxu1 %v4480_v2  ;;  %v2401_v14 = vmul.f32 %v2350_v40, %v4883_v46 }
 0x952   :  { %v2404_v7 = vmul.f32 %v4111_v50, %v4889_v51  ;;  %v2353_v25 = vpop.f32.mrb[71].mxu1  ;;  %4154 = vmatprep.subr.bf16.mxu1 %v4481_v37 }
 0x953   :  { %v2402_v59 = vmul.f32 %v2353_v25, %v4885_v47 }
 0x954   :  { %v2416_v35 = vpack.c.bf16 %v2404_v7, %v2403_v57 }
 0x955   :  { %v2415_v36 = vpack.c.bf16 %v2402_v59, %v2401_v14  ;;  %4155 = vmatpush3.bf16.msra.mxu1 %v4481_v37 }
 0x956   :  { %4156 = vmatprep.subr.bf16.mxu1 %v4482_v58 }
 0x957   :  { %v4114_v41 = vpop.f32.mrb[72].mxu1  ;;  %4140 = vmatprep.mubr.bf16.mxu1 %v2415_v36 }
 0x958   :  { %v2366_v10 = vpop.f32.mrb[73].mxu1  ;;  %4141 = vmatmul.mubr.bf16.gmra.mrb[84].mxu1 %v2416_v35  ;;  %v2407_v56 = vmul.f32 %v4114_v41, %v4903_v17 }
 0x959   :  { %v4115_v63 = vpop.f32.mrb[74].mxu1  ;;  %4157 = vmatpush3.bf16.msra.mxu1 %v4482_v58  ;;  %v2405_v13 = vmul.f32 %v2366_v10, %v4895_v60 }
 0x95a   :  { %v2408_v61 = vmul.f32 %v4115_v63, %v4905_v20  ;;  %v2369_v11 = vpop.f32.mrb[75].mxu1  ;;  %4158 = vmatprep.subr.bf16.mxu1 %v4483_v29 }
 0x95b   :  { %v2406_v24 = vmul.f32 %v2369_v11, %v4897_v62 }
 0x95c   :  { %v2418_v15 = vpack.c.bf16 %v2408_v61, %v2407_v56 }
 0x95d   :  { %v2417_v3 = vpack.c.bf16 %v2406_v24, %v2405_v13  ;;  %4159 = vmatpush3.bf16.msra.mxu1 %v4483_v29 }
 0x95e   :  { %4160 = vmatprep.subr.bf16.mxu1 %v4484_v12 }
 0x95f   :  { %v4118_v23 = vpop.f32.mrb[76].mxu1  ;;  %4144 = vmatprep.mubr.bf16.mxu1 %v2417_v3 }
 0x960   :  { %v2382_v8 = vpop.f32.mrb[77].mxu1  ;;  %4145 = vmatmul.mubr.bf16.gmra.mrb[88].mxu1 %v2418_v15  ;;  %v2411_v2 = vmul.f32 %v4118_v23, %v4915_v52 }
 0x961   :  { %v4119_v9 = vpop.f32.mrb[78].mxu1  ;;  %4161 = vmatpush3.bf16.msra.mxu1 %v4484_v12  ;;  %v2409_v4 = vmul.f32 %v2382_v8, %v4907_v28 }
 0x962   :  { %v2412_v16 = vmul.f32 %v4119_v9, %v4917_v54  ;;  %v2385_v27 = vpop.f32.mrb[79].mxu1  ;;  %4162 = vmatprep.subr.bf16.mxu1 %v4485_v19 }
 0x963   :  { %v2410_v21 = vmul.f32 %v2385_v27, %v4911_v34 }
 0x964   :  { %v2420_v32 = vpack.c.bf16 %v2412_v16, %v2411_v2 }
 0x965   :  { %v2419_v22 = vpack.c.bf16 %v2410_v21, %v2409_v4  ;;  %4163 = vmatpush3.bf16.msra.mxu1 %v4485_v19 }
 0x966   :  { %4164 = vmatprep.subr.bf16.mxu1 %v4486_v31 }
 0x967   :  { %4148 = vmatprep.mubr.bf16.mxu1 %v2419_v22 }
 0x968   :  { %4149 = vmatmul.mubr.bf16.gmra.mrb[92].mxu1 %v2420_v32 }
 0x969   :  { %4165 = vmatpush3.bf16.msra.mxu1 %v4486_v31  ;;  %4168 = vmatprep.mubr.bf16.mxu1 %v5142_v0 }
 0x96a   :  { %4166 = vmatprep.subr.bf16.mxu1 %v4487_v38 }
 0x96d   :  { %4167 = vmatpush3.bf16.msra.mxu1 %v4487_v38 }
 0x970   :  { %4169 = vmatmul.mubr.bf16.vlgmr.msra.gmra.mrb[80].mxu1 %v5140_v5 }
 0x971   :  { %4172 = vmatprep.mubr.bf16.mxu1 %v5150_v18 }
 0x978   :  { %4173 = vmatmul.mubr.bf16.gmra.mrb[84].mxu1 %v5147_v33 }
 0x979   :  { %4176 = vmatprep.mubr.bf16.mxu1 %v5158_v48 }
 0x980   :  { %4177 = vmatmul.mubr.bf16.gmra.mrb[88].mxu1 %v5155_v1 }
 0x981   :  { %4180 = vmatprep.mubr.bf16.mxu1 %v5166_v53 }
 0x988   :  { %4181 = vmatmul.mubr.bf16.gmra.mrb[92].mxu1 %v5163_v55 }
 0xa43   :  { %v4170_v30 = vpop.f32.mrb[80].mxu1 }
 0xa44   :  { %v2755_v37 = vadd.f32 %v4170_v30, %v3398_v26  ;;  %v2682_v0 = vpop.f32.mrb[81].mxu1 }
 0xa45   :  { %v2753_v39 = vadd.f32 %v3398_v26, %v2682_v0  ;;  %v4171_v40 = vpop.f32.mrb[82].mxu1 }
 0xa46   :  { %v2756_v50 = vadd.f32 %v4171_v40, %v3398_v26  ;;  %v2685_v5 = vpop.f32.mrb[83].mxu1  ;;  %v2771_v18 = vmax.f32 %v2755_v37, 0.0 }
 0xa47   :  { %v2754_v57 = vadd.f32 %v3398_v26, %v2685_v5  ;;  %v2769_v33 = vmax.f32 %v2753_v39, 0.0 }
 0xa48   :  { %v2772_v7 = vmax.f32 %v2756_v50, 0.0 }
 0xa49   :  { %v2770_v25 = vmax.f32 %v2754_v57, 0.0 }
 0xa4a   :  { %v5203_v48 = vpack.c.bf16 %v2772_v7, %v2771_v18 }
 0xa4b   :  { %v5205_v1 = vpack.c.bf16 %v2770_v25, %v2769_v33  ;;  %v4174_v53 = vpop.f32.mrb[84].mxu1  ;;  %v4488_v33 = vld [vmem:[#allocation10 + $0x140] sm:$0xff]   ;;  %v4512_v25 = vld [vmem:[#allocation2 + $0x8] sm:$0xff]  }
 0xa4c   :  { %v2759_v58 = vadd.f32 %v4174_v53, %v3398_v26  ;;  %v2698_v55 = vpop.f32.mrb[85].mxu1  ;;  %v4513_v53 = vld [vmem:[#allocation2 + $0x10] sm:$0xff]  }
 0xa4d   :  { %v2757_v14 = vadd.f32 %v3398_v26, %v2698_v55  ;;  %v4175_v59 = vpop.f32.mrb[86].mxu1  ;;  %4184 = vmatprep.subr.bf16.mxu0 %v5205_v1  ;;  %v4491_v55 = vld [vmem:[#allocation10 + $0x158] sm:$0xff]  }
 0xa4e   :  { %v2760_v35 = vadd.f32 %v4175_v59, %v3398_v26  ;;  %v2701_v36 = vpop.f32.mrb[87].mxu1  ;;  %4185 = vmatpush3.bf16.msra.mxu0 %v5205_v1  ;;  %v2775_v41 = vmax.f32 %v2759_v58, 0.0  ;;  %v4490_v58 = vld [vmem:[#allocation10 + $0x150] sm:$0xff]   ;;  %v4515_v59 = vld [vmem:[#allocation2 + $0x20] sm:$0xff]  }
 0xa4f   :  { %v2758_v29 = vadd.f32 %v3398_v26, %v2701_v36  ;;  %4186 = vmatprep.subr.bf16.mxu0 %v5203_v48  ;;  %v2773_v63 = vmax.f32 %v2757_v14, 0.0  ;;  %v4514_v14 = vld [vmem:[#allocation2 + $0x18] sm:$0xff]   ;;  %v4493_v36 = vld [vmem:[#allocation10 + $0x168] sm:$0xff]  }
 0xa50   :  { %v2776_v10 = vmax.f32 %v2760_v35, 0.0  ;;  %v4492_v35 = vld [vmem:[#allocation10 + $0x160] sm:$0xff]  }
 0xa51   :  { %v2774_v56 = vmax.f32 %v2758_v29, 0.0  ;;  %v4516_v29 = vld [vmem:[#allocation2 + $0x28] sm:$0xff]  }
 0xa52   :  { %v5210_v61 = vpack.c.bf16 %v2776_v10, %v2775_v41  ;;  %4187 = vmatpush3.bf16.msra.mxu0 %v5203_v48  ;;  %v4517_v41 = vld [vmem:[#allocation2 + $0x30] sm:$0xff]  }
 0xa53   :  { %v5213_v11 = vpack.c.bf16 %v2774_v56, %v2773_v63  ;;  %v4178_v12 = vpop.f32.mrb[88].mxu1  ;;  %v4494_v10 = vld [vmem:[#allocation10 + $0x170] sm:$0xff]   ;;  %v4495_v63 = vld [vmem:[#allocation10 + $0x178] sm:$0xff]   ;;  %v4496_v56 = vld [vmem:[#allocation8 + $0x140] sm:$0xff]  }
 0xa54   :  { %v2763_v13 = vadd.f32 %v4178_v12, %v3398_v26  ;;  %v2714_v24 = vpop.f32.mrb[89].mxu1 }
 0xa55   :  { %v2761_v15 = vadd.f32 %v3398_v26, %v2714_v24  ;;  %v4179_v3 = vpop.f32.mrb[90].mxu1  ;;  %4188 = vmatprep.subr.bf16.mxu0 %v5213_v11 }
 0xa56   :  { %v2764_v19 = vadd.f32 %v4179_v3, %v3398_v26  ;;  %v2717_v23 = vpop.f32.mrb[91].mxu1  ;;  %4189 = vmatpush3.bf16.msra.mxu0 %v5213_v11  ;;  %v2779_v9 = vmax.f32 %v2763_v13, 0.0 }
 0xa57   :  { %v2762_v8 = vadd.f32 %v3398_v26, %v2717_v23  ;;  %4190 = vmatprep.subr.bf16.mxu0 %v5210_v61  ;;  %v2777_v16 = vmax.f32 %v2761_v15, 0.0 }
 0xa58   :  { %v2780_v2 = vmax.f32 %v2764_v19, 0.0 }
 0xa59   :  { %v2778_v27 = vmax.f32 %v2762_v8, 0.0 }
 0xa5a   :  { %v5218_v31 = vpack.c.bf16 %v2780_v2, %v2779_v9  ;;  %4191 = vmatpush3.bf16.msra.mxu0 %v5210_v61  ;;  %v4497_v2 = vld [vmem:[#allocation8 + $0x148] sm:$0xff]  }
 0xa5b   :  { %v5221_v4 = vpack.c.bf16 %v2778_v27, %v2777_v16  ;;  %v4182_v21 = vpop.f32.mrb[92].mxu1 }
 0xa5c   :  { %v2767_v32 = vadd.f32 %v4182_v21, %v3398_v26  ;;  %v2730_v22 = vpop.f32.mrb[93].mxu1 }
 0xa5d   :  { %v2765_v38 = vadd.f32 %v3398_v26, %v2730_v22  ;;  %v4183_v30 = vpop.f32.mrb[94].mxu1  ;;  %4192 = vmatprep.subr.bf16.mxu0 %v5221_v4 }
 0xa5e   :  { %v2768_v37 = vadd.f32 %v4183_v30, %v3398_v26  ;;  %v2733_v0 = vpop.f32.mrb[95].mxu1  ;;  %4193 = vmatpush3.bf16.msra.mxu0 %v5221_v4  ;;  %v2783_v40 = vmax.f32 %v2767_v32, 0.0 }
 0xa5f   :  { %v2766_v39 = vadd.f32 %v3398_v26, %v2733_v0  ;;  %4194 = vmatprep.subr.bf16.mxu0 %v5218_v31  ;;  %v2781_v5 = vmax.f32 %v2765_v38, 0.0  ;;  %v4489_v26 = vld [vmem:[#allocation10 + $0x148] sm:$0xff]  }
 0xa60   :  { %v2784_v50 = vmax.f32 %v2768_v37, 0.0  ;;  %v4499_v37 = vld [vmem:[#allocation8 + $0x158] sm:$0xff]  }
 0xa61   :  { %v2782_v57 = vmax.f32 %v2766_v39, 0.0 }
 0xa62   :  { %v5226_v18 = vpack.c.bf16 %v2784_v50, %v2783_v40  ;;  %4195 = vmatpush3.bf16.msra.mxu0 %v5218_v31 }
 0xa63   :  { %v5229_v7 = vpack.c.bf16 %v2782_v57, %v2781_v5 }
 0xa65   :  { %4196 = vmatprep.subr.bf16.mxu0 %v5229_v7 }
 0xa66   :  { %4197 = vmatpush3.bf16.msra.mxu0 %v5229_v7 }
 0xa67   :  { %4198 = vmatprep.subr.bf16.mxu0 %v5226_v18 }
 0xa6a   :  { %4199 = vmatpush3.bf16.msra.mxu0 %v5226_v18 }
 0xa6b   :  { %4216 = vmatprep.subr.bf16.mxu0 %v4488_v33 }
 0xa6d   :  { %4201 = vmatmul.mubr.bf16.vlgmr.msra.gmra.mrb[64].mxu0 %v4512_v25 }
 0xa6e   :  { %4204 = vmatprep.mubr.bf16.mxu0 %v4513_v53  ;;  %4217 = vmatpush3.bf16.msra.mxu0 %v4488_v33 }
 0xa6f   :  { %4218 = vmatprep.subr.bf16.mxu0 %v4489_v26 }
 0xa72   :  { %4219 = vmatpush3.bf16.msra.mxu0 %v4489_v26  ;;  %v4501_v26 = vld [vmem:[#allocation8 + $0x168] sm:$0xff]  }
 0xa73   :  { %4220 = vmatprep.subr.bf16.mxu0 %v4490_v58 }
 0xa75   :  { %4205 = vmatmul.mubr.bf16.gmra.mrb[68].mxu0 %v4514_v14 }
 0xa76   :  { %4208 = vmatprep.mubr.bf16.mxu0 %v4515_v59  ;;  %4221 = vmatpush3.bf16.msra.mxu0 %v4490_v58 }
 0xa77   :  { %4222 = vmatprep.subr.bf16.mxu0 %v4491_v55 }
 0xa7a   :  { %4223 = vmatpush3.bf16.msra.mxu0 %v4491_v55 }
 0xa7b   :  { %4224 = vmatprep.subr.bf16.mxu0 %v4492_v35 }
 0xa7d   :  { %4209 = vmatmul.mubr.bf16.gmra.mrb[72].mxu0 %v4516_v29 }
 0xa7e   :  { %4212 = vmatprep.mubr.bf16.mxu0 %v4517_v41  ;;  %4225 = vmatpush3.bf16.msra.mxu0 %v4492_v35 }
 0xa7f   :  { %4226 = vmatprep.subr.bf16.mxu0 %v4493_v36 }
 0xa82   :  { %4227 = vmatpush3.bf16.msra.mxu0 %v4493_v36  ;;  %v4503_v36 = vld [vmem:[#allocation8 + $0x178] sm:$0xff]  }
 0xa83   :  { %4228 = vmatprep.subr.bf16.mxu0 %v4494_v10 }
 0xa85   :  { %4213 = vmatmul.mubr.bf16.gmra.mrb[76].mxu0 %v5112_v6 }
 0xa86   :  { %4229 = vmatpush3.bf16.msra.mxu0 %v4494_v10 }
 0xa87   :  { %4230 = vmatprep.subr.bf16.mxu0 %v4495_v63 }
 0xa8a   :  { %4231 = vmatpush3.bf16.msra.mxu0 %v4495_v63 }
 0xa8b   :  { %4248 = vmatprep.subr.bf16.mxu0 %v4496_v56 }
 0xb40   :  { %v4202_v12 = vpop.f32.mrb[64].mxu0 }
 0xb41   :  { %v2827_v13 = vpop.f32.mrb[65].mxu0  ;;  %v2892_v15 = vmul.f32 %v4202_v12, %v4877_v43 }
 0xb42   :  { %v4203_v24 = vpop.f32.mrb[66].mxu0  ;;  %v2890_v23 = vmul.f32 %v2827_v13, %v4875_v42 }
 0xb43   :  { %v2893_v3 = vmul.f32 %v4203_v24, %v4881_v45  ;;  %v2830_v19 = vpop.f32.mrb[67].mxu0  ;;  %v4498_v45 = vld [vmem:[#allocation8 + $0x150] sm:$0xff]  }
 0xb44   :  { %v2891_v6 = vmul.f32 %v2830_v19, %v4879_v44 }
 0xb45   :  { %v2907_v8 = vpack.c.bf16 %v2893_v3, %v2892_v15 }
 0xb46   :  { %v2906_v9 = vpack.c.bf16 %v2891_v6, %v2890_v23 }
 0xb48   :  { %v4206_v16 = vpop.f32.mrb[68].mxu0  ;;  %4232 = vmatprep.mubr.bf16.mxu0 %v2906_v9 }
 0xb49   :  { %v2843_v27 = vpop.f32.mrb[69].mxu0  ;;  %4233 = vmatmul.mubr.bf16.vlgmr.msra.gmra.mrb[80].mxu0 %v2907_v8  ;;  %v2896_v32 = vmul.f32 %v4206_v16, %v4887_v49 }
 0xb4a   :  { %v4207_v21 = vpop.f32.mrb[70].mxu0  ;;  %4249 = vmatpush3.bf16.msra.mxu0 %v4496_v56  ;;  %v2894_v42 = vmul.f32 %v2843_v27, %v4883_v46  ;;  %v4500_v46 = vld [vmem:[#allocation8 + $0x160] sm:$0xff]  }
 0xb4b   :  { %v2897_v43 = vmul.f32 %v4207_v21, %v4889_v51  ;;  %v2846_v22 = vpop.f32.mrb[71].mxu0  ;;  %4250 = vmatprep.subr.bf16.mxu0 %v4497_v2 }
 0xb4c   :  { %v2895_v44 = vmul.f32 %v2846_v22, %v4885_v47 }
 0xb4d   :  { %v2909_v38 = vpack.c.bf16 %v2897_v43, %v2896_v32 }
 0xb4e   :  { %v2908_v30 = vpack.c.bf16 %v2895_v44, %v2894_v42  ;;  %4251 = vmatpush3.bf16.msra.mxu0 %v4497_v2 }
 0xb4f   :  { %4252 = vmatprep.subr.bf16.mxu0 %v4498_v45 }
 0xb50   :  { %v4210_v0 = vpop.f32.mrb[72].mxu0  ;;  %4236 = vmatprep.mubr.bf16.mxu0 %v2908_v30 }
 0xb51   :  { %v2859_v39 = vpop.f32.mrb[73].mxu0  ;;  %4237 = vmatmul.mubr.bf16.gmra.mrb[84].mxu0 %v2909_v38  ;;  %v2900_v49 = vmul.f32 %v4210_v0, %v4903_v17 }
 0xb52   :  { %v4211_v40 = vpop.f32.mrb[74].mxu0  ;;  %4253 = vmatpush3.bf16.msra.mxu0 %v4498_v45  ;;  %v2898_v47 = vmul.f32 %v2859_v39, %v4895_v60  ;;  %v4502_v60 = vld [vmem:[#allocation8 + $0x170] sm:$0xff]  }
 0xb53   :  { %v2901_v51 = vmul.f32 %v4211_v40, %v4905_v20  ;;  %v2862_v50 = vpop.f32.mrb[75].mxu0  ;;  %4254 = vmatprep.subr.bf16.mxu0 %v4499_v37 }
 0xb54   :  { %v2899_v5 = vmul.f32 %v2862_v50, %v4897_v62 }
 0xb55   :  { %v2911_v57 = vpack.c.bf16 %v2901_v51, %v2900_v49 }
 0xb56   :  { %v2910_v33 = vpack.c.bf16 %v2899_v5, %v2898_v47  ;;  %4255 = vmatpush3.bf16.msra.mxu0 %v4499_v37 }
 0xb57   :  { %4256 = vmatprep.subr.bf16.mxu0 %v4500_v46 }
 0xb58   :  { %v4214_v25 = vpop.f32.mrb[76].mxu0  ;;  %4240 = vmatprep.mubr.bf16.mxu0 %v2910_v33 }
 0xb59   :  { %v2875_v53 = vpop.f32.mrb[77].mxu0  ;;  %4241 = vmatmul.mubr.bf16.gmra.mrb[88].mxu0 %v2911_v57  ;;  %v2904_v17 = vmul.f32 %v4214_v25, %v4915_v52 }
 0xb5a   :  { %v4215_v58 = vpop.f32.mrb[78].mxu0  ;;  %4257 = vmatpush3.bf16.msra.mxu0 %v4500_v46  ;;  %v2902_v62 = vmul.f32 %v2875_v53, %v4907_v28  ;;  %v3415_v28 = vld [vmem:[#allocation11 + $0x5] ss:$0 sm:$0xff] }
 0xb5b   :  { %v2905_v20 = vmul.f32 %v4215_v58, %v4917_v54  ;;  %v2878_v55 = vpop.f32.mrb[79].mxu0  ;;  %4258 = vmatprep.subr.bf16.mxu0 %v4501_v26 }
 0xb5c   :  { %v2903_v14 = vmul.f32 %v2878_v55, %v4911_v34 }
 0xb5d   :  { %v2913_v59 = vpack.c.bf16 %v2905_v20, %v2904_v17 }
 0xb5e   :  { %v2912_v35 = vpack.c.bf16 %v2903_v14, %v2902_v62  ;;  %4259 = vmatpush3.bf16.msra.mxu0 %v4501_v26 }
 0xb5f   :  { %4260 = vmatprep.subr.bf16.mxu0 %v4502_v60 }
 0xb60   :  { %4244 = vmatprep.mubr.bf16.mxu0 %v2912_v35 }
 0xb61   :  { %4245 = vmatmul.mubr.bf16.gmra.mrb[92].mxu0 %v2913_v59 }
 0xb62   :  { %4261 = vmatpush3.bf16.msra.mxu0 %v4502_v60  ;;  %4264 = vmatprep.mubr.bf16.mxu0 %v5205_v1 }
 0xb63   :  { %4262 = vmatprep.subr.bf16.mxu0 %v4503_v36 }
 0xb66   :  { %4263 = vmatpush3.bf16.msra.mxu0 %v4503_v36 }
 0xb69   :  { %4265 = vmatmul.mubr.bf16.vlgmr.msra.gmra.mrb[80].mxu0 %v5203_v48 }
 0xb6a   :  { %4268 = vmatprep.mubr.bf16.mxu0 %v5213_v11 }
 0xb71   :  { %4269 = vmatmul.mubr.bf16.gmra.mrb[84].mxu0 %v5210_v61 }
 0xb72   :  { %4272 = vmatprep.mubr.bf16.mxu0 %v5221_v4 }
 0xb79   :  { %4273 = vmatmul.mubr.bf16.gmra.mrb[88].mxu0 %v5218_v31 }
 0xb7a   :  { %4276 = vmatprep.mubr.bf16.mxu0 %v5229_v7 }
 0xb81   :  { %4277 = vmatmul.mubr.bf16.gmra.mrb[92].mxu0 %v5226_v18 }
 0xc3c   :  { %v4266_v34 = vpop.f32.mrb[80].mxu0 }
 0xc3d   :  { %v3248_v52 = vadd.f32 %v4266_v34, %v3415_v28  ;;  %v3175_v54 = vpop.f32.mrb[81].mxu0 }
 0xc3e   :  { %v3246_v1 = vadd.f32 %v3415_v28, %v3175_v54  ;;  %v4267_v29 = vpop.f32.mrb[82].mxu0 }
 0xc3f   :  { %3264 = vst [vmem:[#allocation13 + $0x10] sm:$0xff] %v3248_v52  ;;  %v3249_v48 = vadd.f32 %v4267_v29, %v3415_v28  ;;  %v3178_v41 = vpop.f32.mrb[83].mxu0 }
 0xc40   :  { %3262 = vst [vmem:[#allocation13] sm:$0xff] %v3246_v1  ;;  %v3247_v11 = vadd.f32 %v3415_v28, %v3178_v41 }
 0xc41   :  { %3265 = vst [vmem:[#allocation13 + $0x18] sm:$0xff] %v3249_v48 }
 0xc42   :  { %3263 = vst [vmem:[#allocation13 + $0x8] sm:$0xff] %v3247_v11 }
 0xc44   :  { %v4270_v61 = vpop.f32.mrb[84].mxu0 }
 0xc45   :  { %v3252_v4 = vadd.f32 %v4270_v61, %v3415_v28  ;;  %v3191_v31 = vpop.f32.mrb[85].mxu0 }
 0xc46   :  { %v3250_v10 = vadd.f32 %v3415_v28, %v3191_v31  ;;  %v4271_v7 = vpop.f32.mrb[86].mxu0 }
 0xc47   :  { %3268 = vst [vmem:[#allocation13 + $0x30] sm:$0xff] %v3252_v4  ;;  %v3253_v18 = vadd.f32 %v4271_v7, %v3415_v28  ;;  %v3194_v63 = vpop.f32.mrb[87].mxu0 }
 0xc48   :  { %3266 = vst [vmem:[#allocation13 + $0x20] sm:$0xff] %v3250_v10  ;;  %v3251_v56 = vadd.f32 %v3415_v28, %v3194_v63 }
 0xc49   :  { %3269 = vst [vmem:[#allocation13 + $0x38] sm:$0xff] %v3253_v18 }
 0xc4a   :  { %3267 = vst [vmem:[#allocation13 + $0x28] sm:$0xff] %v3251_v56 }
 0xc4c   :  { %v4274_v12 = vpop.f32.mrb[88].mxu0 }
 0xc4d   :  { %v3256_v13 = vadd.f32 %v4274_v12, %v3415_v28  ;;  %v3207_v24 = vpop.f32.mrb[89].mxu0 }
 0xc4e   :  { %v3254_v15 = vadd.f32 %v3415_v28, %v3207_v24  ;;  %v4275_v3 = vpop.f32.mrb[90].mxu0 }
 0xc4f   :  { %3272 = vst [vmem:[#allocation13 + $0x50] sm:$0xff] %v3256_v13  ;;  %v3257_v19 = vadd.f32 %v4275_v3, %v3415_v28  ;;  %v3210_v23 = vpop.f32.mrb[91].mxu0 }
 0xc50   :  { %3270 = vst [vmem:[#allocation13 + $0x40] sm:$0xff] %v3254_v15  ;;  %v3255_v6 = vadd.f32 %v3415_v28, %v3210_v23 }
 0xc51   :  { %3273 = vst [vmem:[#allocation13 + $0x58] sm:$0xff] %v3257_v19 }
 0xc52   :  { %3271 = vst [vmem:[#allocation13 + $0x48] sm:$0xff] %v3255_v6 }
 0xc54   :  { %v4278_v8 = vpop.f32.mrb[92].mxu0 }
 0xc55   :  { %v3260_v9 = vadd.f32 %v4278_v8, %v3415_v28  ;;  %v3223_v2 = vpop.f32.mrb[93].mxu0 }
 0xc56   :  { %v3258_v16 = vadd.f32 %v3415_v28, %v3223_v2  ;;  %v4279_v27 = vpop.f32.mrb[94].mxu0 }
 0xc57   :  { %3276 = vst [vmem:[#allocation13 + $0x70] sm:$0xff] %v3260_v9  ;;  %v3261_v21 = vadd.f32 %v4279_v27, %v3415_v28  ;;  %v3226_v32 = vpop.f32.mrb[95].mxu0 }
 0xc58   :  { %3274 = vst [vmem:[#allocation13 + $0x60] sm:$0xff] %v3258_v16  ;;  %v3259_v43 = vadd.f32 %v3415_v28, %v3226_v32 }
 0xc59   :  { %3277 = vst [vmem:[#allocation13 + $0x78] sm:$0xff] %v3261_v21 }
 0xc5a   :  { %3275 = vst [vmem:[#allocation13 + $0x68] sm:$0xff] %v3259_v43 }
 0xc5b   :  { %4661 = shalt.err (!%p4658_p10)
}
 0xc5c   :  { %s4662_s28 = scalar_lea.hbm %s5281_s6, 2048 }
 0xc5d   :  { %p4663_p11 = scmp.ne.s32.totalorder %s5281_s6, %s4662_s28  ;;  %p4666_p12 = scmp.lt.u32.totalorder %s4662_s28, %s5281_s6 }
 0xc5f   :  { %p4668_p13 = pnand %p4666_p12, %p4663_p11 }
 0xc61   :  { %4671 = shalt.err (!%p4668_p13)
}
 0xc62   :  { %3289 = dma.vmem_to_hbm [thread:$0]  %s3284_s0, 2048, %s5281_s6, [#allocation4], %s4683_s7, %s4683_s7, %s4684_s8  }
 0xc63   :  { %4680 = dma.done.wait [#allocation4], 2048  }
 0xc64   :  { %4681 = vsyncadd [#allocation4], 4294965248 }
 0xc65   :  { %3293 = vsyncpa [#allocation3], 1 }
 0xc66   :  { %3294 = vsyncpa [#allocation6], 1 }
 0xc67   :  { %3295 = vsyncpa [#allocation9], 1 }
 0xc68   :  { %3296 = vsyncpa [#allocation12], 1 }
 0xc69   :  { %3297 = vsyncpa [#allocation4], 1 }

</bundles_post_ra>
